<compile_context>
chip_gen: v7x
topology: tpu7x:2x2x1
jax: 0.10.0
libtpu: 0.0.40
codegen_flags: <defaults>
</compile_context>

<pallas_src>
import jax
import jax.numpy as jnp
from jax.experimental import pallas as pl
from jax.experimental.pallas import tpu as pltpu


# ------------------------------ fused kernel -------------------------------

def net_kernel(x_ref,
               t1_ref, b1_ref, s1e_ref, s1o_ref, r1e_ref, r1o_ref,
               g1_ref, d1_ref,
               t2_ref, b2_ref, s2e_ref, s2o_ref, r2e_ref, r2o_ref,
               g2_ref, d2_ref,
               wf1_ref, bf1_ref, g3_ref, d3_ref, wf2_ref, bf2_ref,
               o_ref):
    f32 = jnp.float32

    # ---- conv1 (1->10, 5x5, valid): 5 width-Toeplitz matmuls --------------
    # c1: (24, 240), columns = j*10 + c   (j = output width, c = channel)
    c1 = b1_ref[...] + jnp.dot(x_ref[0, 0:24, :], t1_ref[0],
                               preferred_element_type=f32)
    for di in range(1, 5):
        c1 = c1 + jnp.dot(x_ref[0, di:di + 24, :], t1_ref[di],
                          preferred_element_type=f32)

    # ---- 2x2 max-pool (gather matmuls) + BatchNorm2d(10) + ReLU -----------
    cw = jnp.maximum(jnp.dot(c1, s1e_ref[...], preferred_element_type=f32),
                     jnp.dot(c1, s1o_ref[...], preferred_element_type=f32))
    p1 = jnp.maximum(jnp.dot(r1e_ref[...], cw, preferred_element_type=f32),
                     jnp.dot(r1o_ref[...], cw, preferred_element_type=f32))
    h1 = jnp.maximum(p1 * g1_ref[...] + d1_ref[...], 0.0)        # (12, 120)

    # ---- conv2 (10->20, 5x5); Dropout2d is identity in eval mode ----------
    c2 = b2_ref[...] + jnp.dot(h1[0:8, :], t2_ref[0],
                               preferred_element_type=f32)
    for di in range(1, 5):
        c2 = c2 + jnp.dot(h1[di:di + 8, :], t2_ref[di],
                          preferred_element_type=f32)            # (8, 160)

    # ---- 2x2 max-pool + BatchNorm2d(20) + ReLU ----------------------------
    cw2 = jnp.maximum(jnp.dot(c2, s2e_ref[...], preferred_element_type=f32),
                      jnp.dot(c2, s2o_ref[...], preferred_element_type=f32))
    p2 = jnp.maximum(jnp.dot(r2e_ref[...], cw2, preferred_element_type=f32),
                     jnp.dot(r2o_ref[...], cw2, preferred_element_type=f32))
    h2 = jnp.maximum(p2 * g2_ref[...] + d2_ref[...], 0.0)        # (4, 80)

    # ---- FC head (N padded to 128 lanes) -----------------------------------
    # Linear(320, 50): 4 row-matmuls (avoids an in-kernel flatten reshape).
    h = bf1_ref[...]
    for r in range(4):
        h = h + jnp.dot(h2[r:r + 1, :], wf1_ref[r],
                        preferred_element_type=f32)              # (1, 128)
    h = jnp.maximum(h * g3_ref[...] + d3_ref[...], 0.0)          # BN1d + ReLU
    # Dropout: identity in eval mode.
    z = jnp.dot(h, wf2_ref[...], preferred_element_type=f32) + bf2_ref[...]
    # log_softmax; padded lanes carry a -1e30 bias -> exp() == 0.
    z = z - jnp.max(z, axis=-1, keepdims=True)
    o_ref[0] = z - jnp.log(jnp.sum(jnp.exp(z), axis=-1, keepdims=True))


# --------------------------- host-side preparation --------------------------

def bn_fold(gamma, beta, mean, var, eps=1e-5):
    scale = gamma / jnp.sqrt(var + eps)
    return scale, beta - mean * scale


def conv_width_toeplitz(w, in_w, out_w):
    """w: (kh, kw, cin, cout) -> T: (kh, in_w*cin, out_w*cout) with
    T[di, jj*cin+ci, j*cout+co] = w[di, jj-j, ci, co] when 0 <= jj-j < kw."""
    kh, kw, cin, cout = w.shape
    jj = jnp.arange(in_w)[:, None]
    j = jnp.arange(out_w)[None, :]
    off = jj - j
    valid = (off >= 0) & (off < kw)
    offc = jnp.clip(off, 0, kw - 1)
    t = jnp.where(valid[None, :, :, None, None], w[:, offc, :, :], 0.0)
    t = t.transpose(0, 1, 3, 2, 4)               # (kh, in_w, cin, out_w, cout)
    return t.reshape(kh, in_w * cin, out_w * cout)


def pool_col_selectors(out_w, c):
    """0/1 gather matrices (2*out_w*c, out_w*c) picking even / odd width
    blocks of an interleaved (width, channel) lane layout."""
    m = jnp.arange(out_w * c)
    even = jnp.zeros((2 * out_w * c, out_w * c), jnp.float32)
    even = even.at[2 * (m // c) * c + m % c, m].set(1.0)
    odd = jnp.zeros((2 * out_w * c, out_w * c), jnp.float32)
    odd = odd.at[(2 * (m // c) + 1) * c + m % c, m].set(1.0)
    return even, odd


def pool_row_selectors(out_h):
    i = jnp.arange(out_h)
    even = jnp.zeros((out_h, 2 * out_h), jnp.float32).at[i, 2 * i].set(1.0)
    odd = jnp.zeros((out_h, 2 * out_h), jnp.float32).at[i, 2 * i + 1].set(1.0)
    return even, odd


def prepare_params(p):
    """Fold BN, build Toeplitz conv matrices / pool selectors, pad the FC
    head to 128 lanes.  Returns weights in the kernel's argument order."""
    t1 = conv_width_toeplitz(p["w_c1"].transpose(2, 3, 1, 0), 28, 24)  # (5,28,240)
    t2 = conv_width_toeplitz(p["w_c2"].transpose(2, 3, 1, 0), 12, 8)   # (5,120,160)
    b1 = jnp.tile(p["b_c1"], 24).reshape(1, 240)
    b2 = jnp.tile(p["b_c2"], 8).reshape(1, 160)

    s1e, s1o = pool_col_selectors(12, 10)        # (240, 120)
    r1e, r1o = pool_row_selectors(12)            # (12, 24)
    s2e, s2o = pool_col_selectors(4, 20)         # (160, 80)
    r2e, r2o = pool_row_selectors(4)             # (4, 8)

    g1, d1 = bn_fold(p["g_bn1"], p["be_bn1"], p["m_bn1"], p["v_bn1"])
    g2, d2 = bn_fold(p["g_bn2"], p["be_bn2"], p["m_bn2"], p["v_bn2"])
    g3, d3 = bn_fold(p["g_bn3"], p["be_bn3"], p["m_bn3"], p["v_bn3"])
    g1 = jnp.tile(g1, 12).reshape(1, 120)
    d1 = jnp.tile(d1, 12).reshape(1, 120)
    g2 = jnp.tile(g2, 4).reshape(1, 80)
    d2 = jnp.tile(d2, 4).reshape(1, 80)

    # fc1 rows: torch flatten order (c,h,w) -> kernel order (h,w,c); pad N->128.
    wf1 = p["w_f1"].reshape(20, 4, 4, 50).transpose(1, 2, 0, 3).reshape(320, 50)
    wf1 = jnp.pad(wf1, ((0, 0), (0, 78))).reshape(4, 80, 128)
    bf1 = jnp.pad(p["b_f1"], (0, 78)).reshape(1, 128)
    g3 = jnp.pad(g3, (0, 78)).reshape(1, 128)
    d3 = jnp.pad(d3, (0, 78)).reshape(1, 128)
    wf2 = jnp.pad(p["w_f2"], ((0, 78), (0, 118)))                  # (128, 128)
    bf2 = jnp.pad(p["b_f2"], (0, 118), constant_values=-1e30).reshape(1, 128)

    return (t1, b1, s1e, s1o, r1e, r1o, g1, d1,
            t2, b2, s2e, s2o, r2e, r2o, g2, d2,
            wf1, bf1, g3, d3, wf2, bf2)


# ------------------------------- forward pass -------------------------------

@jax.jit
def net_forward(x, weights):
    B = x.shape[0]
    x3 = x.reshape(B, 28, 28)

    def resident(w):                      # weights: fetched once, stay in VMEM
        if w.ndim == 2:
            return pl.BlockSpec(w.shape, lambda b: (0, 0))
        return pl.BlockSpec(w.shape, lambda b: (0, 0, 0))

    out = pl.pallas_call(
        net_kernel,
        out_shape=jax.ShapeDtypeStruct((B, 1, 128), jnp.float32),
        grid=(B,),
        in_specs=[pl.BlockSpec((1, 28, 28), lambda b: (b, 0, 0))]
                 + [resident(w) for w in weights],
        out_specs=pl.BlockSpec((1, 1, 128), lambda b: (b, 0, 0)),
        compiler_params=pltpu.CompilerParams(
            dimension_semantics=("parallel",)),
    )(x3, *weights)
    return out.reshape(B, 128)[:, :10]


# --------------------------------- params -----------------------------------

def init_params(key):
    ks = jax.random.split(key, 20)

    def nrm(k, shape, s=0.1):
        return s * jax.random.normal(k, shape, jnp.float32)

    p = {
        "w_c1": nrm(ks[0], (10, 1, 5, 5)),
        "b_c1": nrm(ks[1], (10,)),
        "w_c2": nrm(ks[2], (20, 10, 5, 5)),
        "b_c2": nrm(ks[3], (20,)),
        "w_f1": nrm(ks[4], (320, 50)),
        "b_f1": nrm(ks[5], (50,)),
        "w_f2": nrm(ks[6], (50, 10)),
        "b_f2": nrm(ks[7], (10,)),
    }
    # BatchNorm params perturbed deterministically so the affine path is used.
    for name, c, k0 in (("bn1", 10, 8), ("bn2", 20, 12), ("bn3", 50, 16)):
        p[f"g_{name}"] = 1.0 + nrm(ks[k0], (c,))
        p[f"be_{name}"] = nrm(ks[k0 + 1], (c,))
        p[f"m_{name}"] = nrm(ks[k0 + 2], (c,))
        p[f"v_{name}"] = 1.0 + 0.1 * jax.random.uniform(ks[k0 + 3], (c,))
    return p


if __name__ == "__main__":
    root = jax.random.PRNGKey(0)
    k_param, k_x = jax.random.split(root)
    params = init_params(k_param)
    weights = prepare_params(params)
    # Input must be (B, 1, 28, 28) so that the conv stack flattens to 320.
    x = jax.random.normal(k_x, (2, 1, 28, 28), jnp.float32)

    out = net_forward(x, weights)
    out = jax.block_until_ready(out)
    assert out.shape == (2, 10)
    # log_softmax rows should exp-sum to ~1
    assert bool(jnp.all(jnp.abs(jnp.sum(jnp.exp(out), axis=1) - 1.0) < 1e-4))
    print("KERNEL_OK")
</pallas_src>

<mosaic_0001>
module attributes {stable_mosaic.version = 11 : i64} {
  func.func @net_kernel(%arg0: i32, %arg1: memref<1x28x28xf32, #tpu.memory_space<vmem>>, %arg2: memref<5x28x240xf32, #tpu.memory_space<vmem>>, %arg3: memref<1x240xf32, #tpu.memory_space<vmem>>, %arg4: memref<240x120xf32, #tpu.memory_space<vmem>>, %arg5: memref<240x120xf32, #tpu.memory_space<vmem>>, %arg6: memref<12x24xf32, #tpu.memory_space<vmem>>, %arg7: memref<12x24xf32, #tpu.memory_space<vmem>>, %arg8: memref<1x120xf32, #tpu.memory_space<vmem>>, %arg9: memref<1x120xf32, #tpu.memory_space<vmem>>, %arg10: memref<5x120x160xf32, #tpu.memory_space<vmem>>, %arg11: memref<1x160xf32, #tpu.memory_space<vmem>>, %arg12: memref<160x80xf32, #tpu.memory_space<vmem>>, %arg13: memref<160x80xf32, #tpu.memory_space<vmem>>, %arg14: memref<4x8xf32, #tpu.memory_space<vmem>>, %arg15: memref<4x8xf32, #tpu.memory_space<vmem>>, %arg16: memref<1x80xf32, #tpu.memory_space<vmem>>, %arg17: memref<1x80xf32, #tpu.memory_space<vmem>>, %arg18: memref<4x80x128xf32, #tpu.memory_space<vmem>>, %arg19: memref<1x128xf32, #tpu.memory_space<vmem>>, %arg20: memref<1x128xf32, #tpu.memory_space<vmem>>, %arg21: memref<1x128xf32, #tpu.memory_space<vmem>>, %arg22: memref<128x128xf32, #tpu.memory_space<vmem>>, %arg23: memref<1x128xf32, #tpu.memory_space<vmem>>, %arg24: memref<1x1x128xf32, #tpu.memory_space<vmem>>) attributes {dimension_semantics = [#tpu.dimension_semantics<parallel>], iteration_bounds = array<i64: 2>, scalar_prefetch = 0 : i64, scratch_operands = 0 : i64, tpu.core_type = #tpu.core_type<tc>, window_params = [{transform_indices = @transform_0, window_bounds = array<i64: 1, 28, 28>}, {pipeline_mode = #tpu.pipeline_mode<synchronous>, transform_indices = @transform_1, window_bounds = array<i64: 5, 28, 240>}, {pipeline_mode = #tpu.pipeline_mode<synchronous>, transform_indices = @transform_2, window_bounds = array<i64: 1, 240>}, {pipeline_mode = #tpu.pipeline_mode<synchronous>, transform_indices = @transform_3, window_bounds = array<i64: 240, 120>}, {pipeline_mode = #tpu.pipeline_mode<synchronous>, transform_indices = @transform_4, window_bounds = array<i64: 240, 120>}, {pipeline_mode = #tpu.pipeline_mode<synchronous>, transform_indices = @transform_5, window_bounds = array<i64: 12, 24>}, {pipeline_mode = #tpu.pipeline_mode<synchronous>, transform_indices = @transform_6, window_bounds = array<i64: 12, 24>}, {pipeline_mode = #tpu.pipeline_mode<synchronous>, transform_indices = @transform_7, window_bounds = array<i64: 1, 120>}, {pipeline_mode = #tpu.pipeline_mode<synchronous>, transform_indices = @transform_8, window_bounds = array<i64: 1, 120>}, {pipeline_mode = #tpu.pipeline_mode<synchronous>, transform_indices = @transform_9, window_bounds = array<i64: 5, 120, 160>}, {pipeline_mode = #tpu.pipeline_mode<synchronous>, transform_indices = @transform_10, window_bounds = array<i64: 1, 160>}, {pipeline_mode = #tpu.pipeline_mode<synchronous>, transform_indices = @transform_11, window_bounds = array<i64: 160, 80>}, {pipeline_mode = #tpu.pipeline_mode<synchronous>, transform_indices = @transform_12, window_bounds = array<i64: 160, 80>}, {pipeline_mode = #tpu.pipeline_mode<synchronous>, transform_indices = @transform_13, window_bounds = array<i64: 4, 8>}, {pipeline_mode = #tpu.pipeline_mode<synchronous>, transform_indices = @transform_14, window_bounds = array<i64: 4, 8>}, {pipeline_mode = #tpu.pipeline_mode<synchronous>, transform_indices = @transform_15, window_bounds = array<i64: 1, 80>}, {pipeline_mode = #tpu.pipeline_mode<synchronous>, transform_indices = @transform_16, window_bounds = array<i64: 1, 80>}, {pipeline_mode = #tpu.pipeline_mode<synchronous>, transform_indices = @transform_17, window_bounds = array<i64: 4, 80, 128>}, {pipeline_mode = #tpu.pipeline_mode<synchronous>, transform_indices = @transform_18, window_bounds = array<i64: 1, 128>}, {pipeline_mode = #tpu.pipeline_mode<synchronous>, transform_indices = @transform_19, window_bounds = array<i64: 1, 128>}, {pipeline_mode = #tpu.pipeline_mode<synchronous>, transform_indices = @transform_20, window_bounds = array<i64: 1, 128>}, {pipeline_mode = #tpu.pipeline_mode<synchronous>, transform_indices = @transform_21, window_bounds = array<i64: 128, 128>}, {pipeline_mode = #tpu.pipeline_mode<synchronous>, transform_indices = @transform_22, window_bounds = array<i64: 1, 128>}, {transform_indices = @transform_23, window_bounds = array<i64: 1, 1, 128>}]} {
    %c0 = arith.constant 0 : index
    %c0_0 = arith.constant 0 : index
    %0 = vector.load %arg3[%c0, %c0_0] : memref<1x240xf32, #tpu.memory_space<vmem>>, vector<1x240xf32>
    %c0_1 = arith.constant 0 : index
    %c0_2 = arith.constant 0 : index
    %c0_3 = arith.constant 0 : index
    %1 = vector.load %arg1[%c0_1, %c0_2, %c0_3] : memref<1x28x28xf32, #tpu.memory_space<vmem>>, vector<1x24x28xf32>
    %2 = vector.shape_cast %1 : vector<1x24x28xf32> to vector<24x28xf32>
    %c0_4 = arith.constant 0 : index
    %c0_5 = arith.constant 0 : index
    %c0_6 = arith.constant 0 : index
    %3 = vector.load %arg2[%c0_4, %c0_5, %c0_6] : memref<5x28x240xf32, #tpu.memory_space<vmem>>, vector<1x28x240xf32>
    %4 = vector.shape_cast %3 : vector<1x28x240xf32> to vector<28x240xf32>
    %cst = arith.constant dense<0.000000e+00> : vector<24x240xf32>
    %5 = tpu.matmul %2, %4, %cst {dimension_numbers = #tpu.dot_dimension_numbers<[1], [0], [0], [1], [0, 0, 1, 1], [], []>} : vector<24x28xf32>, vector<28x240xf32>, vector<24x240xf32> -> vector<24x240xf32>
    %6 = vector.broadcast %0 : vector<1x240xf32> to vector<24x240xf32>
    %7 = arith.addf %6, %5 : vector<24x240xf32>
    %c0_7 = arith.constant 0 : index
    %c1 = arith.constant 1 : index
    %c0_8 = arith.constant 0 : index
    %8 = vector.load %arg1[%c0_7, %c1, %c0_8] : memref<1x28x28xf32, #tpu.memory_space<vmem>>, vector<1x24x28xf32>
    %9 = vector.shape_cast %8 : vector<1x24x28xf32> to vector<24x28xf32>
    %c1_9 = arith.constant 1 : index
    %c0_10 = arith.constant 0 : index
    %c0_11 = arith.constant 0 : index
    %10 = vector.load %arg2[%c1_9, %c0_10, %c0_11] : memref<5x28x240xf32, #tpu.memory_space<vmem>>, vector<1x28x240xf32>
    %11 = vector.shape_cast %10 : vector<1x28x240xf32> to vector<28x240xf32>
    %cst_12 = arith.constant dense<0.000000e+00> : vector<24x240xf32>
    %12 = tpu.matmul %9, %11, %cst_12 {dimension_numbers = #tpu.dot_dimension_numbers<[1], [0], [0], [1], [0, 0, 1, 1], [], []>} : vector<24x28xf32>, vector<28x240xf32>, vector<24x240xf32> -> vector<24x240xf32>
    %13 = arith.addf %7, %12 : vector<24x240xf32>
    %c0_13 = arith.constant 0 : index
    %c2 = arith.constant 2 : index
    %c0_14 = arith.constant 0 : index
    %14 = vector.load %arg1[%c0_13, %c2, %c0_14] : memref<1x28x28xf32, #tpu.memory_space<vmem>>, vector<1x24x28xf32>
    %15 = vector.shape_cast %14 : vector<1x24x28xf32> to vector<24x28xf32>
    %c2_15 = arith.constant 2 : index
    %c0_16 = arith.constant 0 : index
    %c0_17 = arith.constant 0 : index
    %16 = vector.load %arg2[%c2_15, %c0_16, %c0_17] : memref<5x28x240xf32, #tpu.memory_space<vmem>>, vector<1x28x240xf32>
    %17 = vector.shape_cast %16 : vector<1x28x240xf32> to vector<28x240xf32>
    %cst_18 = arith.constant dense<0.000000e+00> : vector<24x240xf32>
    %18 = tpu.matmul %15, %17, %cst_18 {dimension_numbers = #tpu.dot_dimension_numbers<[1], [0], [0], [1], [0, 0, 1, 1], [], []>} : vector<24x28xf32>, vector<28x240xf32>, vector<24x240xf32> -> vector<24x240xf32>
    %19 = arith.addf %13, %18 : vector<24x240xf32>
    %c0_19 = arith.constant 0 : index
    %c3 = arith.constant 3 : index
    %c0_20 = arith.constant 0 : index
    %20 = vector.load %arg1[%c0_19, %c3, %c0_20] : memref<1x28x28xf32, #tpu.memory_space<vmem>>, vector<1x24x28xf32>
    %21 = vector.shape_cast %20 : vector<1x24x28xf32> to vector<24x28xf32>
    %c3_21 = arith.constant 3 : index
    %c0_22 = arith.constant 0 : index
    %c0_23 = arith.constant 0 : index
    %22 = vector.load %arg2[%c3_21, %c0_22, %c0_23] : memref<5x28x240xf32, #tpu.memory_space<vmem>>, vector<1x28x240xf32>
    %23 = vector.shape_cast %22 : vector<1x28x240xf32> to vector<28x240xf32>
    %cst_24 = arith.constant dense<0.000000e+00> : vector<24x240xf32>
    %24 = tpu.matmul %21, %23, %cst_24 {dimension_numbers = #tpu.dot_dimension_numbers<[1], [0], [0], [1], [0, 0, 1, 1], [], []>} : vector<24x28xf32>, vector<28x240xf32>, vector<24x240xf32> -> vector<24x240xf32>
    %25 = arith.addf %19, %24 : vector<24x240xf32>
    %c0_25 = arith.constant 0 : index
    %c4 = arith.constant 4 : index
    %c0_26 = arith.constant 0 : index
    %26 = vector.load %arg1[%c0_25, %c4, %c0_26] : memref<1x28x28xf32, #tpu.memory_space<vmem>>, vector<1x24x28xf32>
    %27 = vector.shape_cast %26 : vector<1x24x28xf32> to vector<24x28xf32>
    %c4_27 = arith.constant 4 : index
    %c0_28 = arith.constant 0 : index
    %c0_29 = arith.constant 0 : index
    %28 = vector.load %arg2[%c4_27, %c0_28, %c0_29] : memref<5x28x240xf32, #tpu.memory_space<vmem>>, vector<1x28x240xf32>
    %29 = vector.shape_cast %28 : vector<1x28x240xf32> to vector<28x240xf32>
    %cst_30 = arith.constant dense<0.000000e+00> : vector<24x240xf32>
    %30 = tpu.matmul %27, %29, %cst_30 {dimension_numbers = #tpu.dot_dimension_numbers<[1], [0], [0], [1], [0, 0, 1, 1], [], []>} : vector<24x28xf32>, vector<28x240xf32>, vector<24x240xf32> -> vector<24x240xf32>
    %31 = arith.addf %25, %30 : vector<24x240xf32>
    %c0_31 = arith.constant 0 : index
    %c0_32 = arith.constant 0 : index
    %32 = vector.load %arg4[%c0_31, %c0_32] : memref<240x120xf32, #tpu.memory_space<vmem>>, vector<240x120xf32>
    %cst_33 = arith.constant dense<0.000000e+00> : vector<24x120xf32>
    %33 = tpu.matmul %31, %32, %cst_33 {dimension_numbers = #tpu.dot_dimension_numbers<[1], [0], [0], [1], [0, 0, 1, 1], [], []>} : vector<24x240xf32>, vector<240x120xf32>, vector<24x120xf32> -> vector<24x120xf32>
    %c0_34 = arith.constant 0 : index
    %c0_35 = arith.constant 0 : index
    %34 = vector.load %arg5[%c0_34, %c0_35] : memref<240x120xf32, #tpu.memory_space<vmem>>, vector<240x120xf32>
    %cst_36 = arith.constant dense<0.000000e+00> : vector<24x120xf32>
    %35 = tpu.matmul %31, %34, %cst_36 {dimension_numbers = #tpu.dot_dimension_numbers<[1], [0], [0], [1], [0, 0, 1, 1], [], []>} : vector<24x240xf32>, vector<240x120xf32>, vector<24x120xf32> -> vector<24x120xf32>
    %36 = arith.maximumf %33, %35 : vector<24x120xf32>
    %c0_37 = arith.constant 0 : index
    %c0_38 = arith.constant 0 : index
    %37 = vector.load %arg6[%c0_37, %c0_38] : memref<12x24xf32, #tpu.memory_space<vmem>>, vector<12x24xf32>
    %cst_39 = arith.constant dense<0.000000e+00> : vector<12x120xf32>
    %38 = tpu.matmul %37, %36, %cst_39 {dimension_numbers = #tpu.dot_dimension_numbers<[1], [0], [0], [1], [0, 0, 1, 1], [], []>} : vector<12x24xf32>, vector<24x120xf32>, vector<12x120xf32> -> vector<12x120xf32>
    %c0_40 = arith.constant 0 : index
    %c0_41 = arith.constant 0 : index
    %39 = vector.load %arg7[%c0_40, %c0_41] : memref<12x24xf32, #tpu.memory_space<vmem>>, vector<12x24xf32>
    %cst_42 = arith.constant dense<0.000000e+00> : vector<12x120xf32>
    %40 = tpu.matmul %39, %36, %cst_42 {dimension_numbers = #tpu.dot_dimension_numbers<[1], [0], [0], [1], [0, 0, 1, 1], [], []>} : vector<12x24xf32>, vector<24x120xf32>, vector<12x120xf32> -> vector<12x120xf32>
    %41 = arith.maximumf %38, %40 : vector<12x120xf32>
    %c0_43 = arith.constant 0 : index
    %c0_44 = arith.constant 0 : index
    %42 = vector.load %arg8[%c0_43, %c0_44] : memref<1x120xf32, #tpu.memory_space<vmem>>, vector<1x120xf32>
    %43 = vector.broadcast %42 : vector<1x120xf32> to vector<12x120xf32>
    %44 = arith.mulf %41, %43 : vector<12x120xf32>
    %c0_45 = arith.constant 0 : index
    %c0_46 = arith.constant 0 : index
    %45 = vector.load %arg9[%c0_45, %c0_46] : memref<1x120xf32, #tpu.memory_space<vmem>>, vector<1x120xf32>
    %46 = vector.broadcast %45 : vector<1x120xf32> to vector<12x120xf32>
    %47 = arith.addf %44, %46 : vector<12x120xf32>
    %cst_47 = arith.constant 0.000000e+00 : f32
    %48 = vector.broadcast %cst_47 : f32 to vector<12x120xf32>
    %49 = arith.maximumf %47, %48 : vector<12x120xf32>
    %c0_48 = arith.constant 0 : index
    %c0_49 = arith.constant 0 : index
    %50 = vector.load %arg11[%c0_48, %c0_49] : memref<1x160xf32, #tpu.memory_space<vmem>>, vector<1x160xf32>
    %51 = vector.extract_strided_slice %49 {offsets = [0, 0], sizes = [8, 120], strides = [1, 1]} : vector<12x120xf32> to vector<8x120xf32>
    %c0_50 = arith.constant 0 : index
    %c0_51 = arith.constant 0 : index
    %c0_52 = arith.constant 0 : index
    %52 = vector.load %arg10[%c0_50, %c0_51, %c0_52] : memref<5x120x160xf32, #tpu.memory_space<vmem>>, vector<1x120x160xf32>
    %53 = vector.shape_cast %52 : vector<1x120x160xf32> to vector<120x160xf32>
    %cst_53 = arith.constant dense<0.000000e+00> : vector<8x160xf32>
    %54 = tpu.matmul %51, %53, %cst_53 {dimension_numbers = #tpu.dot_dimension_numbers<[1], [0], [0], [1], [0, 0, 1, 1], [], []>} : vector<8x120xf32>, vector<120x160xf32>, vector<8x160xf32> -> vector<8x160xf32>
    %55 = vector.broadcast %50 : vector<1x160xf32> to vector<8x160xf32>
    %56 = arith.addf %55, %54 : vector<8x160xf32>
    %57 = vector.extract_strided_slice %49 {offsets = [1, 0], sizes = [8, 120], strides = [1, 1]} : vector<12x120xf32> to vector<8x120xf32>
    %c1_54 = arith.constant 1 : index
    %c0_55 = arith.constant 0 : index
    %c0_56 = arith.constant 0 : index
    %58 = vector.load %arg10[%c1_54, %c0_55, %c0_56] : memref<5x120x160xf32, #tpu.memory_space<vmem>>, vector<1x120x160xf32>
    %59 = vector.shape_cast %58 : vector<1x120x160xf32> to vector<120x160xf32>
    %cst_57 = arith.constant dense<0.000000e+00> : vector<8x160xf32>
    %60 = tpu.matmul %57, %59, %cst_57 {dimension_numbers = #tpu.dot_dimension_numbers<[1], [0], [0], [1], [0, 0, 1, 1], [], []>} : vector<8x120xf32>, vector<120x160xf32>, vector<8x160xf32> -> vector<8x160xf32>
    %61 = arith.addf %56, %60 : vector<8x160xf32>
    %62 = vector.extract_strided_slice %49 {offsets = [2, 0], sizes = [8, 120], strides = [1, 1]} : vector<12x120xf32> to vector<8x120xf32>
    %c2_58 = arith.constant 2 : index
    %c0_59 = arith.constant 0 : index
    %c0_60 = arith.constant 0 : index
    %63 = vector.load %arg10[%c2_58, %c0_59, %c0_60] : memref<5x120x160xf32, #tpu.memory_space<vmem>>, vector<1x120x160xf32>
    %64 = vector.shape_cast %63 : vector<1x120x160xf32> to vector<120x160xf32>
    %cst_61 = arith.constant dense<0.000000e+00> : vector<8x160xf32>
    %65 = tpu.matmul %62, %64, %cst_61 {dimension_numbers = #tpu.dot_dimension_numbers<[1], [0], [0], [1], [0, 0, 1, 1], [], []>} : vector<8x120xf32>, vector<120x160xf32>, vector<8x160xf32> -> vector<8x160xf32>
    %66 = arith.addf %61, %65 : vector<8x160xf32>
    %67 = vector.extract_strided_slice %49 {offsets = [3, 0], sizes = [8, 120], strides = [1, 1]} : vector<12x120xf32> to vector<8x120xf32>
    %c3_62 = arith.constant 3 : index
    %c0_63 = arith.constant 0 : index
    %c0_64 = arith.constant 0 : index
    %68 = vector.load %arg10[%c3_62, %c0_63, %c0_64] : memref<5x120x160xf32, #tpu.memory_space<vmem>>, vector<1x120x160xf32>
    %69 = vector.shape_cast %68 : vector<1x120x160xf32> to vector<120x160xf32>
    %cst_65 = arith.constant dense<0.000000e+00> : vector<8x160xf32>
    %70 = tpu.matmul %67, %69, %cst_65 {dimension_numbers = #tpu.dot_dimension_numbers<[1], [0], [0], [1], [0, 0, 1, 1], [], []>} : vector<8x120xf32>, vector<120x160xf32>, vector<8x160xf32> -> vector<8x160xf32>
    %71 = arith.addf %66, %70 : vector<8x160xf32>
    %72 = vector.extract_strided_slice %49 {offsets = [4, 0], sizes = [8, 120], strides = [1, 1]} : vector<12x120xf32> to vector<8x120xf32>
    %c4_66 = arith.constant 4 : index
    %c0_67 = arith.constant 0 : index
    %c0_68 = arith.constant 0 : index
    %73 = vector.load %arg10[%c4_66, %c0_67, %c0_68] : memref<5x120x160xf32, #tpu.memory_space<vmem>>, vector<1x120x160xf32>
    %74 = vector.shape_cast %73 : vector<1x120x160xf32> to vector<120x160xf32>
    %cst_69 = arith.constant dense<0.000000e+00> : vector<8x160xf32>
    %75 = tpu.matmul %72, %74, %cst_69 {dimension_numbers = #tpu.dot_dimension_numbers<[1], [0], [0], [1], [0, 0, 1, 1], [], []>} : vector<8x120xf32>, vector<120x160xf32>, vector<8x160xf32> -> vector<8x160xf32>
    %76 = arith.addf %71, %75 : vector<8x160xf32>
    %c0_70 = arith.constant 0 : index
    %c0_71 = arith.constant 0 : index
    %77 = vector.load %arg12[%c0_70, %c0_71] : memref<160x80xf32, #tpu.memory_space<vmem>>, vector<160x80xf32>
    %cst_72 = arith.constant dense<0.000000e+00> : vector<8x80xf32>
    %78 = tpu.matmul %76, %77, %cst_72 {dimension_numbers = #tpu.dot_dimension_numbers<[1], [0], [0], [1], [0, 0, 1, 1], [], []>} : vector<8x160xf32>, vector<160x80xf32>, vector<8x80xf32> -> vector<8x80xf32>
    %c0_73 = arith.constant 0 : index
    %c0_74 = arith.constant 0 : index
    %79 = vector.load %arg13[%c0_73, %c0_74] : memref<160x80xf32, #tpu.memory_space<vmem>>, vector<160x80xf32>
    %cst_75 = arith.constant dense<0.000000e+00> : vector<8x80xf32>
    %80 = tpu.matmul %76, %79, %cst_75 {dimension_numbers = #tpu.dot_dimension_numbers<[1], [0], [0], [1], [0, 0, 1, 1], [], []>} : vector<8x160xf32>, vector<160x80xf32>, vector<8x80xf32> -> vector<8x80xf32>
    %81 = arith.maximumf %78, %80 : vector<8x80xf32>
    %c0_76 = arith.constant 0 : index
    %c0_77 = arith.constant 0 : index
    %82 = vector.load %arg14[%c0_76, %c0_77] : memref<4x8xf32, #tpu.memory_space<vmem>>, vector<4x8xf32>
    %cst_78 = arith.constant dense<0.000000e+00> : vector<4x80xf32>
    %83 = tpu.matmul %82, %81, %cst_78 {dimension_numbers = #tpu.dot_dimension_numbers<[1], [0], [0], [1], [0, 0, 1, 1], [], []>} : vector<4x8xf32>, vector<8x80xf32>, vector<4x80xf32> -> vector<4x80xf32>
    %c0_79 = arith.constant 0 : index
    %c0_80 = arith.constant 0 : index
    %84 = vector.load %arg15[%c0_79, %c0_80] : memref<4x8xf32, #tpu.memory_space<vmem>>, vector<4x8xf32>
    %cst_81 = arith.constant dense<0.000000e+00> : vector<4x80xf32>
    %85 = tpu.matmul %84, %81, %cst_81 {dimension_numbers = #tpu.dot_dimension_numbers<[1], [0], [0], [1], [0, 0, 1, 1], [], []>} : vector<4x8xf32>, vector<8x80xf32>, vector<4x80xf32> -> vector<4x80xf32>
    %86 = arith.maximumf %83, %85 : vector<4x80xf32>
    %c0_82 = arith.constant 0 : index
    %c0_83 = arith.constant 0 : index
    %87 = vector.load %arg16[%c0_82, %c0_83] : memref<1x80xf32, #tpu.memory_space<vmem>>, vector<1x80xf32>
    %88 = vector.broadcast %87 : vector<1x80xf32> to vector<4x80xf32>
    %89 = arith.mulf %86, %88 : vector<4x80xf32>
    %c0_84 = arith.constant 0 : index
    %c0_85 = arith.constant 0 : index
    %90 = vector.load %arg17[%c0_84, %c0_85] : memref<1x80xf32, #tpu.memory_space<vmem>>, vector<1x80xf32>
    %91 = vector.broadcast %90 : vector<1x80xf32> to vector<4x80xf32>
    %92 = arith.addf %89, %91 : vector<4x80xf32>
    %cst_86 = arith.constant 0.000000e+00 : f32
    %93 = vector.broadcast %cst_86 : f32 to vector<4x80xf32>
    %94 = arith.maximumf %92, %93 : vector<4x80xf32>
    %c0_87 = arith.constant 0 : index
    %c0_88 = arith.constant 0 : index
    %95 = vector.load %arg19[%c0_87, %c0_88] : memref<1x128xf32, #tpu.memory_space<vmem>>, vector<1x128xf32>
    %96 = vector.extract_strided_slice %94 {offsets = [0, 0], sizes = [1, 80], strides = [1, 1]} : vector<4x80xf32> to vector<1x80xf32>
    %c0_89 = arith.constant 0 : index
    %c0_90 = arith.constant 0 : index
    %c0_91 = arith.constant 0 : index
    %97 = vector.load %arg18[%c0_89, %c0_90, %c0_91] : memref<4x80x128xf32, #tpu.memory_space<vmem>>, vector<1x80x128xf32>
    %98 = vector.shape_cast %97 : vector<1x80x128xf32> to vector<80x128xf32>
    %cst_92 = arith.constant dense<0.000000e+00> : vector<1x128xf32>
    %99 = tpu.matmul %96, %98, %cst_92 {dimension_numbers = #tpu.dot_dimension_numbers<[1], [0], [0], [1], [0, 0, 1, 1], [], []>} : vector<1x80xf32>, vector<80x128xf32>, vector<1x128xf32> -> vector<1x128xf32>
    %100 = arith.addf %95, %99 : vector<1x128xf32>
    %101 = vector.extract_strided_slice %94 {offsets = [1, 0], sizes = [1, 80], strides = [1, 1]} : vector<4x80xf32> to vector<1x80xf32>
    %c1_93 = arith.constant 1 : index
    %c0_94 = arith.constant 0 : index
    %c0_95 = arith.constant 0 : index
    %102 = vector.load %arg18[%c1_93, %c0_94, %c0_95] : memref<4x80x128xf32, #tpu.memory_space<vmem>>, vector<1x80x128xf32>
    %103 = vector.shape_cast %102 : vector<1x80x128xf32> to vector<80x128xf32>
    %cst_96 = arith.constant dense<0.000000e+00> : vector<1x128xf32>
    %104 = tpu.matmul %101, %103, %cst_96 {dimension_numbers = #tpu.dot_dimension_numbers<[1], [0], [0], [1], [0, 0, 1, 1], [], []>} : vector<1x80xf32>, vector<80x128xf32>, vector<1x128xf32> -> vector<1x128xf32>
    %105 = arith.addf %100, %104 : vector<1x128xf32>
    %106 = vector.extract_strided_slice %94 {offsets = [2, 0], sizes = [1, 80], strides = [1, 1]} : vector<4x80xf32> to vector<1x80xf32>
    %c2_97 = arith.constant 2 : index
    %c0_98 = arith.constant 0 : index
    %c0_99 = arith.constant 0 : index
    %107 = vector.load %arg18[%c2_97, %c0_98, %c0_99] : memref<4x80x128xf32, #tpu.memory_space<vmem>>, vector<1x80x128xf32>
    %108 = vector.shape_cast %107 : vector<1x80x128xf32> to vector<80x128xf32>
    %cst_100 = arith.constant dense<0.000000e+00> : vector<1x128xf32>
    %109 = tpu.matmul %106, %108, %cst_100 {dimension_numbers = #tpu.dot_dimension_numbers<[1], [0], [0], [1], [0, 0, 1, 1], [], []>} : vector<1x80xf32>, vector<80x128xf32>, vector<1x128xf32> -> vector<1x128xf32>
    %110 = arith.addf %105, %109 : vector<1x128xf32>
    %111 = vector.extract_strided_slice %94 {offsets = [3, 0], sizes = [1, 80], strides = [1, 1]} : vector<4x80xf32> to vector<1x80xf32>
    %c3_101 = arith.constant 3 : index
    %c0_102 = arith.constant 0 : index
    %c0_103 = arith.constant 0 : index
    %112 = vector.load %arg18[%c3_101, %c0_102, %c0_103] : memref<4x80x128xf32, #tpu.memory_space<vmem>>, vector<1x80x128xf32>
    %113 = vector.shape_cast %112 : vector<1x80x128xf32> to vector<80x128xf32>
    %cst_104 = arith.constant dense<0.000000e+00> : vector<1x128xf32>
    %114 = tpu.matmul %111, %113, %cst_104 {dimension_numbers = #tpu.dot_dimension_numbers<[1], [0], [0], [1], [0, 0, 1, 1], [], []>} : vector<1x80xf32>, vector<80x128xf32>, vector<1x128xf32> -> vector<1x128xf32>
    %115 = arith.addf %110, %114 : vector<1x128xf32>
    %c0_105 = arith.constant 0 : index
    %c0_106 = arith.constant 0 : index
    %116 = vector.load %arg20[%c0_105, %c0_106] : memref<1x128xf32, #tpu.memory_space<vmem>>, vector<1x128xf32>
    %117 = arith.mulf %115, %116 : vector<1x128xf32>
    %c0_107 = arith.constant 0 : index
    %c0_108 = arith.constant 0 : index
    %118 = vector.load %arg21[%c0_107, %c0_108] : memref<1x128xf32, #tpu.memory_space<vmem>>, vector<1x128xf32>
    %119 = arith.addf %117, %118 : vector<1x128xf32>
    %cst_109 = arith.constant 0.000000e+00 : f32
    %120 = vector.broadcast %cst_109 : f32 to vector<1x128xf32>
    %121 = arith.maximumf %119, %120 : vector<1x128xf32>
    %c0_110 = arith.constant 0 : index
    %c0_111 = arith.constant 0 : index
    %122 = vector.load %arg22[%c0_110, %c0_111] : memref<128x128xf32, #tpu.memory_space<vmem>>, vector<128x128xf32>
    %cst_112 = arith.constant dense<0.000000e+00> : vector<1x128xf32>
    %123 = tpu.matmul %121, %122, %cst_112 {dimension_numbers = #tpu.dot_dimension_numbers<[1], [0], [0], [1], [0, 0, 1, 1], [], []>} : vector<1x128xf32>, vector<128x128xf32>, vector<1x128xf32> -> vector<1x128xf32>
    %c0_113 = arith.constant 0 : index
    %c0_114 = arith.constant 0 : index
    %124 = vector.load %arg23[%c0_113, %c0_114] : memref<1x128xf32, #tpu.memory_space<vmem>>, vector<1x128xf32>
    %125 = arith.addf %123, %124 : vector<1x128xf32>
    %cst_115 = arith.constant dense<0xFF800000> : vector<1xf32>
    %126 = vector.multi_reduction <maximumf>, %125, %cst_115 [1] : vector<1x128xf32> to vector<1xf32>
    %127 = vector.shape_cast %126 : vector<1xf32> to vector<1x1xf32>
    %128 = vector.broadcast %127 : vector<1x1xf32> to vector<1x128xf32>
    %129 = arith.subf %125, %128 : vector<1x128xf32>
    %130 = math.exp %129 : vector<1x128xf32>
    %cst_116 = arith.constant dense<0.000000e+00> : vector<1xf32>
    %131 = vector.multi_reduction <add>, %130, %cst_116 [1] : vector<1x128xf32> to vector<1xf32>
    %132 = vector.shape_cast %131 : vector<1xf32> to vector<1x1xf32>
    %133 = math.log %132 : vector<1x1xf32>
    %134 = vector.broadcast %133 : vector<1x1xf32> to vector<1x128xf32>
    %135 = arith.subf %129, %134 : vector<1x128xf32>
    %c0_117 = arith.constant 0 : index
    %c0_118 = arith.constant 0 : index
    %c0_119 = arith.constant 0 : index
    %136 = vector.load %arg24[%c0_117, %c0_118, %c0_119] : memref<1x1x128xf32, #tpu.memory_space<vmem>>, vector<1x1x128xf32>
    %137 = vector.shape_cast %136 : vector<1x1x128xf32> to vector<1x128xf32>
    %138 = vector.shape_cast %135 : vector<1x128xf32> to vector<1x1x128xf32>
    tpu.vector_store %arg24[%c0_117, %c0_118, %c0_119], %138 {strides = array<i32>} : memref<1x1x128xf32, #tpu.memory_space<vmem>>, vector<1x1x128xf32>,
    return
  }
  func.func @transform_0(%arg0: i32) -> (i32, i32, i32) {
    %c0_i32 = arith.constant 0 : i32
    %c0_i32_0 = arith.constant 0 : i32
    %c0_i32_1 = arith.constant 0 : i32
    return %arg0, %c0_i32, %c0_i32_0 : i32, i32, i32
  }
  func.func @transform_1(%arg0: i32) -> (i32, i32, i32) {
    %c0_i32 = arith.constant 0 : i32
    %c0_i32_0 = arith.constant 0 : i32
    %c0_i32_1 = arith.constant 0 : i32
    %c0_i32_2 = arith.constant 0 : i32
    return %c0_i32, %c0_i32_0, %c0_i32_1 : i32, i32, i32
  }
  func.func @transform_2(%arg0: i32) -> (i32, i32) {
    %c0_i32 = arith.constant 0 : i32
    %c0_i32_0 = arith.constant 0 : i32
    %c0_i32_1 = arith.constant 0 : i32
    return %c0_i32, %c0_i32_0 : i32, i32
  }
  func.func @transform_3(%arg0: i32) -> (i32, i32) {
    %c0_i32 = arith.constant 0 : i32
    %c0_i32_0 = arith.constant 0 : i32
    %c0_i32_1 = arith.constant 0 : i32
    return %c0_i32, %c0_i32_0 : i32, i32
  }
  func.func @transform_4(%arg0: i32) -> (i32, i32) {
    %c0_i32 = arith.constant 0 : i32
    %c0_i32_0 = arith.constant 0 : i32
    %c0_i32_1 = arith.constant 0 : i32
    return %c0_i32, %c0_i32_0 : i32, i32
  }
  func.func @transform_5(%arg0: i32) -> (i32, i32) {
    %c0_i32 = arith.constant 0 : i32
    %c0_i32_0 = arith.constant 0 : i32
    %c0_i32_1 = arith.constant 0 : i32
    return %c0_i32, %c0_i32_0 : i32, i32
  }
  func.func @transform_6(%arg0: i32) -> (i32, i32) {
    %c0_i32 = arith.constant 0 : i32
    %c0_i32_0 = arith.constant 0 : i32
    %c0_i32_1 = arith.constant 0 : i32
    return %c0_i32, %c0_i32_0 : i32, i32
  }
  func.func @transform_7(%arg0: i32) -> (i32, i32) {
    %c0_i32 = arith.constant 0 : i32
    %c0_i32_0 = arith.constant 0 : i32
    %c0_i32_1 = arith.constant 0 : i32
    return %c0_i32, %c0_i32_0 : i32, i32
  }
  func.func @transform_8(%arg0: i32) -> (i32, i32) {
    %c0_i32 = arith.constant 0 : i32
    %c0_i32_0 = arith.constant 0 : i32
    %c0_i32_1 = arith.constant 0 : i32
    return %c0_i32, %c0_i32_0 : i32, i32
  }
  func.func @transform_9(%arg0: i32) -> (i32, i32, i32) {
    %c0_i32 = arith.constant 0 : i32
    %c0_i32_0 = arith.constant 0 : i32
    %c0_i32_1 = arith.constant 0 : i32
    %c0_i32_2 = arith.constant 0 : i32
    return %c0_i32, %c0_i32_0, %c0_i32_1 : i32, i32, i32
  }
  func.func @transform_10(%arg0: i32) -> (i32, i32) {
    %c0_i32 = arith.constant 0 : i32
    %c0_i32_0 = arith.constant 0 : i32
    %c0_i32_1 = arith.constant 0 : i32
    return %c0_i32, %c0_i32_0 : i32, i32
  }
  func.func @transform_11(%arg0: i32) -> (i32, i32) {
    %c0_i32 = arith.constant 0 : i32
    %c0_i32_0 = arith.constant 0 : i32
    %c0_i32_1 = arith.constant 0 : i32
    return %c0_i32, %c0_i32_0 : i32, i32
  }
  func.func @transform_12(%arg0: i32) -> (i32, i32) {
    %c0_i32 = arith.constant 0 : i32
    %c0_i32_0 = arith.constant 0 : i32
    %c0_i32_1 = arith.constant 0 : i32
    return %c0_i32, %c0_i32_0 : i32, i32
  }
  func.func @transform_13(%arg0: i32) -> (i32, i32) {
    %c0_i32 = arith.constant 0 : i32
    %c0_i32_0 = arith.constant 0 : i32
    %c0_i32_1 = arith.constant 0 : i32
    return %c0_i32, %c0_i32_0 : i32, i32
  }
  func.func @transform_14(%arg0: i32) -> (i32, i32) {
    %c0_i32 = arith.constant 0 : i32
    %c0_i32_0 = arith.constant 0 : i32
    %c0_i32_1 = arith.constant 0 : i32
    return %c0_i32, %c0_i32_0 : i32, i32
  }
  func.func @transform_15(%arg0: i32) -> (i32, i32) {
    %c0_i32 = arith.constant 0 : i32
    %c0_i32_0 = arith.constant 0 : i32
    %c0_i32_1 = arith.constant 0 : i32
    return %c0_i32, %c0_i32_0 : i32, i32
  }
  func.func @transform_16(%arg0: i32) -> (i32, i32) {
    %c0_i32 = arith.constant 0 : i32
    %c0_i32_0 = arith.constant 0 : i32
    %c0_i32_1 = arith.constant 0 : i32
    return %c0_i32, %c0_i32_0 : i32, i32
  }
  func.func @transform_17(%arg0: i32) -> (i32, i32, i32) {
    %c0_i32 = arith.constant 0 : i32
    %c0_i32_0 = arith.constant 0 : i32
    %c0_i32_1 = arith.constant 0 : i32
    %c0_i32_2 = arith.constant 0 : i32
    return %c0_i32, %c0_i32_0, %c0_i32_1 : i32, i32, i32
  }
  func.func @transform_18(%arg0: i32) -> (i32, i32) {
    %c0_i32 = arith.constant 0 : i32
    %c0_i32_0 = arith.constant 0 : i32
    %c0_i32_1 = arith.constant 0 : i32
    return %c0_i32, %c0_i32_0 : i32, i32
  }
  func.func @transform_19(%arg0: i32) -> (i32, i32) {
    %c0_i32 = arith.constant 0 : i32
    %c0_i32_0 = arith.constant 0 : i32
    %c0_i32_1 = arith.constant 0 : i32
    return %c0_i32, %c0_i32_0 : i32, i32
  }
  func.func @transform_20(%arg0: i32) -> (i32, i32) {
    %c0_i32 = arith.constant 0 : i32
    %c0_i32_0 = arith.constant 0 : i32
    %c0_i32_1 = arith.constant 0 : i32
    return %c0_i32, %c0_i32_0 : i32, i32
  }
  func.func @transform_21(%arg0: i32) -> (i32, i32) {
    %c0_i32 = arith.constant 0 : i32
    %c0_i32_0 = arith.constant 0 : i32
    %c0_i32_1 = arith.constant 0 : i32
    return %c0_i32, %c0_i32_0 : i32, i32
  }
  func.func @transform_22(%arg0: i32) -> (i32, i32) {
    %c0_i32 = arith.constant 0 : i32
    %c0_i32_0 = arith.constant 0 : i32
    %c0_i32_1 = arith.constant 0 : i32
    return %c0_i32, %c0_i32_0 : i32, i32
  }
  func.func @transform_23(%arg0: i32) -> (i32, i32, i32) {
    %c0_i32 = arith.constant 0 : i32
    %c0_i32_0 = arith.constant 0 : i32
    %c0_i32_1 = arith.constant 0 : i32
    return %arg0, %c0_i32, %c0_i32_0 : i32, i32, i32
  }
}

</mosaic_0001>

<bundles_post_ra>
// kernel: net_forward.1
= control target key start
LH: loop header
LB: loop body
LE: loop exit
PB: predicated region body
PF: predicated region fallthrough
CT: control target
= control target key end

     0   :  { %s5748_s0 = inlined_call_operand.vmem [shape: f32[2,28,28], index: 0, kind: input, shape index: {}]   ;;  %s5749_s1 = inlined_call_operand.vmem [shape: f32[5,28,240], index: 1, kind: input, shape index: {}]   ;;  %s5750_s2 = inlined_call_operand.vmem [shape: f32[1,240], index: 2, kind: input, shape index: {}]   ;;  %s5751_s3 = inlined_call_operand.vmem [shape: f32[240,120], index: 3, kind: input, shape index: {}]   ;;  %s5752_s4 = inlined_call_operand.vmem [shape: f32[240,120], index: 4, kind: input, shape index: {}]   ;;  %s5753_s5 = inlined_call_operand.vmem [shape: f32[12,24], index: 5, kind: input, shape index: {}]   ;;  %s5754_s6 = inlined_call_operand.vmem [shape: f32[12,24], index: 6, kind: input, shape index: {}]   ;;  %s5755_s7 = inlined_call_operand.vmem [shape: f32[1,120], index: 7, kind: input, shape index: {}]   ;;  %s5756_s8 = inlined_call_operand.vmem [shape: f32[1,120], index: 8, kind: input, shape index: {}]   ;;  %s5757_s9 = inlined_call_operand.vmem [shape: f32[5,120,160], index: 9, kind: input, shape index: {}]   ;;  %s5758_s10 = inlined_call_operand.vmem [shape: f32[1,160], index: 10, kind: input, shape index: {}]   ;;  %s5759_s11 = inlined_call_operand.vmem [shape: f32[160,80], index: 11, kind: input, shape index: {}]   ;;  %s5760_s12 = inlined_call_operand.vmem [shape: f32[160,80], index: 12, kind: input, shape index: {}]   ;;  %s5761_s13 = inlined_call_operand.vmem [shape: f32[4,8], index: 13, kind: input, shape index: {}]   ;;  %s5762_s14 = inlined_call_operand.vmem [shape: f32[4,8], index: 14, kind: input, shape index: {}]   ;;  %s5763_s15 = inlined_call_operand.vmem [shape: f32[1,80], index: 15, kind: input, shape index: {}]   ;;  %s5764_s16 = inlined_call_operand.vmem [shape: f32[1,80], index: 16, kind: input, shape index: {}]   ;;  %s5765_s17 = inlined_call_operand.vmem [shape: f32[4,80,128], index: 17, kind: input, shape index: {}]   ;;  %s5766_s18 = inlined_call_operand.vmem [shape: f32[1,128], index: 18, kind: input, shape index: {}]   ;;  %s5767_s19 = inlined_call_operand.vmem [shape: f32[1,128], index: 19, kind: input, shape index: {}]   ;;  %s5768_s20 = inlined_call_operand.vmem [shape: f32[1,128], index: 20, kind: input, shape index: {}]   ;;  %s5769_s21 = inlined_call_operand.vmem [shape: f32[128,128], index: 21, kind: input, shape index: {}]   ;;  %s5770_s22 = inlined_call_operand.vmem [shape: f32[1,128], index: 22, kind: input, shape index: {}]   ;;  %s5771_s23 = inlined_call_operand.hbm [shape: f32[2,1,128], index: 23, kind: output, shape index: {}]  }
   0x1   :  { %5788 = sst [smem:[#allocation12_spill]] %s5748_s0 }
   0x2   :  { %5789 = sst [smem:[#allocation13_spill]] %s5749_s1 }
   0x3   :  { %5790 = sst [smem:[#allocation14_spill]] %s5750_s2 }
   0x4   :  { %5791 = sst [smem:[#allocation15_spill]] %s5751_s3 }
   0x5   :  { %5792 = sst [smem:[#allocation16_spill]] %s5752_s4 }
   0x6   :  { %5793 = sst [smem:[#allocation17_spill]] %s5753_s5 }
   0x7   :  { %5794 = sst [smem:[#allocation18_spill]] %s5754_s6 }
   0x8   :  { %5795 = sst [smem:[#allocation19_spill]] %s5755_s7 }
   0x9   :  { %5796 = sst [smem:[#allocation20_spill]] %s5756_s8 }
   0xa   :  { %5797 = sst [smem:[#allocation21_spill]] %s5757_s9 }
   0xb   :  { %5798 = sst [smem:[#allocation22_spill]] %s5771_s23 }
   0xc   :  { %28 = vsyncpa [#allocation3], 0 }
   0xd   :  { %30 = vsyncpa [#allocation3 + $0x1], 0  ;;  %s4338_s4 = smov 0   ;;  %s4340_s30 = smov 0  }
   0xe   :  { %s4342_s24 = smov 0   ;;  %s4344_s25 = smov 0  }
   0xf LB: > { %5799 = sst [smem:[#allocation5_spill]] %s4199_s4  ;;  %s4359_s5 = sadd.s32 4294967295, %s4211_s25   ;;  %s4211_s25 = sphi %s4344_s25, %s5826_s25   ;;  %s4207_s24 = sphi %s4342_s24, %s5828_s24   ;;  %s4203_s30 = sphi %s4340_s30, %s5830_s30   ;;  %s4199_s4 = sphi %s4338_s4, %s5829_s4  }
  0x10   : > { %5800 = sst [smem:[#allocation6_spill]] %s4207_s24  ;;  %s3149_s1 = sadd.s32 4294967294, %s4211_s25  }
  0x11   : > { %5801 = sst [smem:[#allocation7_spill]] %s4211_s25  ;;  %s4363_s26 = sadd.s32 1, %s4211_s25  }
  0x12   : > { %5802 = sst [smem:[#allocation8_spill]] %s4363_s26  ;;  %s531_s2 = sadd.s32 1, %s4207_s24 }
  0x13   : > { %s528_s6 = ssub.s32 %s4211_s25, %s4363_s26  ;;  %p541_p0 = scmp.ne.s32.totalorder %s4207_s24, %s4203_s30 }
  0x14   : > { %p529_p1 = scmp.eq.s32.totalorder %s528_s6, 0  ;;  %p542_p2 = scmp.eq.s32.totalorder %s4359_s5, 1 }
  0x15   : > { %p547_p3 = scmp.ne.s32.totalorder %s4203_s30, %s4199_s4  ;;  %p548_p4 = scmp.eq.s32.totalorder %s3149_s1, 1 }
  0x16   : > { %s4374_s27 = scalar_select %p529_p1, %s4207_s24, %s531_s2  }
  0x17   : > { %p4376_p5 = por %p542_p2, %p541_p0  ;;  %p4380_p6 = por %p548_p4, %p547_p3 }
  0x18   : > { %5803 = sst [smem:[#allocation9_spill]] %s4374_s27  ;;  %p3152_p7 = scmp.ge.s32.totalorder %s4211_s25, 1 }
  0x19   : > { %s5804_s7 = scalar_select %p4376_p5, 1, 0 }
  0x1a   : > { %s5806_s28 = scalar_select %p4380_p6, 1, 0 }
  0x1b   : > { %5805 = sst [smem:[#allocation10_spill]] %s5804_s7  ;;  %p640_p8 = scmp.lt.s32.totalorder %s4211_s25, 3 }
  0x1c   : > { %5807 = sst [smem:[#allocation11_spill]] %s5806_s28 }
  0x1d   : > { %p641_p9 = pnand %p3152_p7, %p640_p8 }
  0x1e   : > { %s5808_s0 = sld [smem:[#allocation13_spill]] (!%p641_p9)  ;;  %vm730_vm0 = vcmask (!%p641_p9), 1043456   ;;  %vm4213_vm1 = vmmov (!%p641_p9), 1   ;;  %v4214_v7 = vmov (!%p641_p9), 0.0   ;;  %p703_p10 = scmp.lt.s32.totalorder (!%p641_p9), %s4359_s5, 1  ;;  %vm720_vm3 = vcmask (!%p641_p9), 228352  }
  0x1f   : > { %644 = sbr.rel (%p641_p9) target bundleno = 2391 (0x957), region = 112  ;;  %vm4399_vm2 = vmpackc.low (!%p641_p9), %vm730_vm0, %vm4213_vm1  ;;  %928 = vmatprep.mubr.f32.mxu0 (!%p641_p9), %v4214_v7  ;;  %801 = vmatprep.mubr.f32.mxu1 (!%p641_p9), %v4214_v7  ;;  %s5811_s3 = sld [smem:[#allocation12_spill]] (!%p641_p9)  ;;  %v4215_v53 = vmov (!%p641_p9), 0.0|0.0   ;;  %vm1331_vm4 = vcmask (!%p641_p9), 916480   ;;  %vm1536_vm5 = vcmask (!%p641_p9), 195584   ;;  %vm1754_vm6 = vcmask (!%p641_p9), 982016  }
  0x20   : > { %s5812_s25 = sld [smem:[#allocation15_spill]] (!%p641_p9)  ;;  %s5816_s26 = sld [smem:[#allocation17_spill]] (!%p641_p9)  ;;  %vm1874_vm7 = vcmask (!%p641_p9), 1046528   ;;  %vm1984_vm8 = vcmask (!%p641_p9), 1045504   ;;  %vm2094_vm9 = vcmask (!%p641_p9), 1044480   ;;  %vm2302_vm10 = vcmask (!%p641_p9), 261120  }
  0x21   : > { %s5817_s6 = sld [smem:[#allocation18_spill]] (!%p641_p9)  ;;  %s5818_s9 = sld [smem:[#allocation21_spill]] (!%p641_p9)  ;;  %vm4216_vm11 = vmmov (!%p641_p9), 0   ;;  %vm2468_vm12 = vcmask (!%p641_p9), 64512   ;;  %vm2645_vm13 = vcmask (!%p641_p9), 654336   ;;  %vm3067_vm14 = vcmask (!%p641_p9), 1040384  }
  0x22   : > { %s5819_s2 = sld [smem:[#allocation19_spill]] (!%p641_p9)  ;;  %s5820_s8 = sld [smem:[#allocation20_spill]] (!%p641_p9) }
  0x23   : > { %s701_s7 = sand.u32 (!%p641_p9), 1, %s4203_s30  }
  0x24   : > { %v3161_v0 = vld [vmem:[%s5808_s0 + $0x48] sm:$0xff] (!%p641_p9)  ;;  %v3163_v1 = vld [vmem:[%s5808_s0 + $0x58] sm:$0xff] (!%p641_p9)  ;;  %v3160_v2 = vld [vmem:[%s5808_s0 + $0x40] sm:$0xff] (!%p641_p9)  ;;  %s702_s28 = scalar_lea.vmem (!%p641_p9), [#allocation2], %s701_s7  ;;  %s3082_s24 = scalar_lea.sflag (!%p641_p9), [#allocation3], %s701_s7 }
  0x25   : > { %v3633_v3 = vpack.c.bf16 (!%p641_p9), %v3163_v1, %v3161_v0  ;;  %v3162_v4 = vld [vmem:[%s5808_s0 + $0x50] sm:$0xff] (!%p641_p9)  ;;  %v3165_v6 = vld [vmem:[%s5808_s0 + $0x68] sm:$0xff] (!%p641_p9)  ;;  %v3167_v9 = vld [vmem:[%s5808_s0 + $0x78] sm:$0xf] (!%p641_p9) }
  0x26   : > { %v3635_v8 = vpack.c.bf16 %v3162_v4, %v3160_v2  ;;  %v3164_v10 = vld [vmem:[%s5808_s0 + $0x60] sm:$0xff]  ;;  %v3166_v11 = vld [vmem:[%s5808_s0 + $0x70] sm:$0xf]  ;;  %v3637_v12 = vpack.c.bf16 %v3167_v9, %v3165_v6  ;;  %s704_s29 = scalar_select %p703_p10, %s4359_s5, 1  ;;  %v3174_v13 = vld [vmem:[%s5808_s0 + $0x88] sm:$0xff] }
  0x27   : > { %3634 = vmatprep.subr.bf16.mxu0 %v3633_v3  ;;  %v3176_v14 = vld [vmem:[%s5808_s0 + $0x98] sm:$0xff]  ;;  %v3640_v15 = vpack.c.bf16 %v3166_v11, %v3164_v10  ;;  %v3173_v17 = vld [vmem:[%s5808_s0 + $0x80] sm:$0xff]  ;;  %v3175_v18 = vld [vmem:[%s5808_s0 + $0x90] sm:$0xff] }
  0x28   : > { %3636 = vmatpush1.bf16.msra.mxu0 %v3635_v8  ;;  %s3392_s27 = sshll.u32 %s704_s29, 5  ;;  %v3643_v16 = vpack.c.bf16 %v3176_v14, %v3174_v13  ;;  %v3178_v19 = vld [vmem:[%s5808_s0 + $0xa8] sm:$0xff]  ;;  %v3180_v20 = vld [vmem:[%s5808_s0 + $0xb8] sm:$0xf]  ;;  %v3645_v22 = vpack.c.bf16 %v3175_v18, %v3173_v17  ;;  %v3177_v24 = vld [vmem:[%s5808_s0 + $0xa0] sm:$0xff]  ;;  %s5813_s29 = smov %s5812_s25 }
  0x29   : > { %3639 = vmatprep.subr.msk.bf16.mxu0 %vm4399_vm2, %v3637_v12  ;;  %s4436_s4 = scalar_lea.vmem %s5811_s3, %s3392_s27  ;;  %v3647_v23 = vpack.c.bf16 %v3180_v20, %v3178_v19  ;;  %v3179_v25 = vld [vmem:[%s5808_s0 + $0xb0] sm:$0xf]  ;;  %v3187_v26 = vld [vmem:[%s5808_s0 + $0xc8] sm:$0xff]  ;;  %v3189_v27 = vld [vmem:[%s5808_s0 + $0xd8] sm:$0xff]  ;;  %s5814_s27 = sld [smem:[#allocation16_spill]] }
  0x2a   : > { %v837_v21 = vld [vmem:[%s4436_s4 + $0x1] sm:$0xff]  ;;  %v715_v29 = vld [vmem:[%s5808_s0 + $0x18] sm:$0xff]  ;;  %v714_v31 = vld [vmem:[%s5808_s0 + $0x10] sm:$0xff]  ;;  %v3650_v33 = vpack.c.bf16 %v3179_v25, %v3177_v24  ;;  %v3653_v36 = vpack.c.bf16 %v3189_v27, %v3187_v26 }
  0x2b   : > { %v713_v28 = vld [vmem:[%s5808_s0 + $0x8] sm:$0xff]  ;;  %v712_v30 = vld [vmem:[%s5808_s0] sm:$0xff]  ;;  %v719_v38 = vld [vmem:[%s5808_s0 + $0x38] sm:$0xf] }
  0x2c   : > { %3642 = vmatpush1.bf16.msk.msra.mxu0 %vm4399_vm2, %v3640_v15  ;;  %v838_v32 = vld [vmem:[%s4436_s4 + $0x9] sm:$0xff]  ;;  %v3623_v34 = vpack.c.bf16 %v715_v29, %v713_v28  ;;  %v3625_v35 = vpack.c.bf16 %v714_v31, %v712_v30  ;;  %v716_v40 = vld [vmem:[%s5808_s0 + $0x20] sm:$0xff]  ;;  %v839_v43 = vld [vmem:[%s4436_s4 + $0x11] sm:$0xff] }
  0x2d   : > { %3644 = vmatprep.subr.bf16.mxu0 %v3643_v16  ;;  %v717_v37 = vld [vmem:[%s5808_s0 + $0x28] sm:$0xff]  ;;  %v718_v41 = vld [vmem:[%s5808_s0 + $0x30] sm:$0xf]  ;;  %v3186_v44 = vld [vmem:[%s5808_s0 + $0xc0] sm:$0xff] }
  0x2e   : > { %3624 = vmatprep.subr.bf16.mxu1 %v3623_v34  ;;  %v3627_v39 = vpack.c.bf16 %v719_v38, %v717_v37  ;;  %v3630_v42 = vpack.c.bf16 %v718_v41, %v716_v40  ;;  %v3188_v45 = vld [vmem:[%s5808_s0 + $0xd0] sm:$0xff]  ;;  %v3191_v46 = vld [vmem:[%s5808_s0 + $0xe8] sm:$0xff]  ;;  %v3193_v47 = vld [vmem:[%s5808_s0 + $0xf8] sm:$0xf] }
  0x2f   : > { %3170 = vmatmul.mubr.msk.f32.vlgmr.msra.gmra.mrb[0].mxu0 %vm720_vm3, %v837_v21  ;;  %3626 = vmatpush1.bf16.msra.mxu1 %v3625_v35  ;;  %v1301_v48 = vld [vmem:[%s5812_s25] sm:$0xff]  ;;  %v1302_v50 = vld [vmem:[%s5813_s29 + $0x8] sm:$0xff]  ;;  %v3655_v52 = vpack.c.bf16 %v3188_v45, %v3186_v44  ;;  %v3657_v54 = vpack.c.bf16 %v3193_v47, %v3191_v46  ;;  %v3192_v56 = vld [vmem:[%s5808_s0 + $0xf0] sm:$0xf]  ;;  %s5815_s25 = sld [smem:[#allocation14_spill]] }
  0x30   : > { %934 = vmatprep.mubr.f32.mxu0 %v4214_v7  ;;  %3646 = vmatpush1.bf16.msra.mxu0 %v3645_v22  ;;  %v709_v49 = vld [vmem:[%s4436_s4] sm:$0xff]  ;;  %v3200_v57 = vld [vmem:[%s5808_s0 + $0x108] sm:$0xff]  ;;  %v3674_v58 = vpack.c.bf16 %v1302_v50, %v1301_v48  ;;  %v3202_v59 = vld [vmem:[%s5808_s0 + $0x118] sm:$0xff] }
  0x31   : > { %3649 = vmatprep.subr.msk.bf16.mxu0 %vm4399_vm2, %v3647_v23  ;;  %3629 = vmatprep.subr.msk.bf16.mxu1 %vm4399_vm2, %v3627_v39  ;;  %v953_v51 = vld [vmem:[%s4436_s4 + $0x2] sm:$0xff]  ;;  %v1303_v60 = vld [vmem:[%s5813_s29 + $0x10] sm:$0xff]  ;;  %v1304_v61 = vld [vmem:[%s5813_s29 + $0x18] sm:$0xff]  ;;  %v3663_v1 = vpack.c.bf16 %v3202_v59, %v3200_v57 }
  0x32   : > { %v3190_v55 = vld [vmem:[%s5808_s0 + $0xe0] sm:$0xff]  ;;  %v710_v62 = vld [vmem:[%s4436_s4 + $0x8] sm:$0xff]  ;;  %v3677_v2 = vpack.c.bf16 %v1304_v61, %v1303_v60  ;;  %v711_v6 = vld [vmem:[%s4436_s4 + $0x10] sm:$0xff] }
  0x33   : > { %3171 = vmatmul.mubr.msk.f32.gmra.mrb[2].mxu0 %vm720_vm3, %v838_v32  ;;  %3632 = vmatpush1.bf16.msk.msra.mxu1 %vm4399_vm2, %v3630_v42  ;;  %v954_v63 = vld [vmem:[%s4436_s4 + $0xa] sm:$0xff]  ;;  %v3660_v0 = vpack.c.bf16 %v3192_v56, %v3190_v55  ;;  %v1305_v3 = vld [vmem:[%s5813_s29 + $0x20] sm:$0xff]  ;;  %v955_v8 = vld [vmem:[%s4436_s4 + $0x12] sm:$0xff] }
  0x34   : > { %940 = vmatprep.mubr.f32.mxu0 %v4214_v7  ;;  %3652 = vmatpush1.bf16.msk.msra.mxu0 %vm4399_vm2, %v3650_v33  ;;  %v1306_v4 = vld [vmem:[%s5813_s29 + $0x28] sm:$0xff]  ;;  %v3199_v9 = vld [vmem:[%s5808_s0 + $0x100] sm:$0xff]  ;;  %v3201_v10 = vld [vmem:[%s5808_s0 + $0x110] sm:$0xff] }
  0x35   : > { %3654 = vmatprep.subr.bf16.mxu0 %v3653_v36  ;;  %3673 = vmatprep.subr.bf16.mxu1 %v4215_v53  ;;  %v3204_v11 = vld [vmem:[%s5808_s0 + $0x128] sm:$0xff]  ;;  %v3680_v12 = vpack.c.bf16 %v1306_v4, %v1305_v3  ;;  %v3206_v13 = vld [vmem:[%s5808_s0 + $0x138] sm:$0xf]  ;;  %v1307_v14 = vld [vmem:[%s5813_s29 + $0x30] sm:$0xff]  ;;  %v3665_v17 = vpack.c.bf16 %v3201_v10, %v3199_v9 }
  0x36   : > { %3157 = vmatmul.mubr.msk.f32.vlgmr.msra.gmra.mrb[0].mxu1 %vm720_vm3, %v709_v49  ;;  %v1308_v15 = vld [vmem:[%s5813_s29 + $0x38] sm:$0xff]  ;;  %v1069_v16 = vld [vmem:[%s4436_s4 + $0x3] sm:$0xff]  ;;  %v3667_v18 = vpack.c.bf16 %v3206_v13, %v3204_v11  ;;  %v3205_v20 = vld [vmem:[%s5808_s0 + $0x130] sm:$0xf] }
  0x37   : > { %3172 = vmatmul.mubr.msk.f32.gmra.mrb[4].mxu0 %vm720_vm3, %v839_v43  ;;  %807 = vmatprep.mubr.f32.mxu1 %v4214_v7  ;;  %v3203_v19 = vld [vmem:[%s5808_s0 + $0x120] sm:$0xff]  ;;  %v3683_v21 = vpack.c.bf16 %v1308_v15, %v1307_v14  ;;  %v1310_v23 = vld [vmem:[%s5813_s29 + $0x48] sm:$0xff]  ;;  %v1311_v27 = vld [vmem:[%s5813_s29 + $0x50] sm:$0xff]  ;;  %s5822_s0 = sld [smem:[#allocation22_spill]] }
  0x38   : > { %1044 = vmatprep.mubr.f32.mxu0 %v4214_v7  ;;  %3675 = vmatpush1.bf16.msra.mxu1 %v3674_v58  ;;  %v1309_v22 = vld [vmem:[%s5813_s29 + $0x40] sm:$0xff]  ;;  %v1070_v24 = vld [vmem:[%s4436_s4 + $0xb] sm:$0xff]  ;;  %v3670_v25 = vpack.c.bf16 %v3205_v20, %v3203_v19  ;;  %v1312_v28 = vld [vmem:[%s5813_s29 + $0x58] sm:$0xff] }
  0x39   : > { %3676 = vmatprep.subr.bf16.mxu1 %v4215_v53  ;;  %v3686_v26 = vpack.c.bf16 %v1310_v23, %v1309_v22  ;;  %v1071_v29 = vld [vmem:[%s4436_s4 + $0x13] sm:$0xff]  ;;  %v1421_v30 = vld [vmem:[%s5814_s27] sm:$0xff]  ;;  %v1422_v31 = vld [vmem:[%s5814_s27 + $0x8] sm:$0xff]  ;;  %v3689_v32 = vpack.c.bf16 %v1312_v28, %v1311_v27 }
  0x3a   : > { %3158 = vmatmul.mubr.msk.f32.gmra.mrb[2].mxu1 %vm720_vm3, %v710_v62  ;;  %v1313_v5 = vld [vmem:[%s5813_s29 + $0x60] sm:$0xff]  ;;  %v1314_v33 = vld [vmem:[%s5813_s29 + $0x68] sm:$0xff]  ;;  %v3719_v35 = vpack.c.bf16 %v1422_v31, %v1421_v30  ;;  %v1423_v36 = vld [vmem:[%s5814_s27 + $0x10] sm:$0xff] }
  0x3b   : > { %3183 = vmatmul.mubr.msk.f32.vlgmr.msra.gmra.mrb[0].mxu0 %vm720_vm3, %v953_v51  ;;  %813 = vmatprep.mubr.f32.mxu1 %v4214_v7  ;;  %v1185_v34 = vld [vmem:[%s4436_s4 + $0x4] sm:$0xff]  ;;  %v1424_v37 = vld [vmem:[%s5814_s27 + $0x18] sm:$0xff]  ;;  %v3692_v38 = vpack.c.bf16 %v1314_v33, %v1313_v5  ;;  %v1315_v39 = vld [vmem:[%s5813_s29 + $0x70] sm:$0xff] }
  0x3c   : > { %1050 = vmatprep.mubr.f32.mxu0 %v4214_v7  ;;  %3656 = vmatpush1.bf16.msra.mxu0 %v3655_v52  ;;  %v1316_v40 = vld [vmem:[%s5813_s29 + $0x78] sm:$0xff]  ;;  %v1186_v41 = vld [vmem:[%s4436_s4 + $0xc] sm:$0xff]  ;;  %v3722_v42 = vpack.c.bf16 %v1424_v37, %v1423_v36  ;;  %v1425_v43 = vld [vmem:[%s5814_s27 + $0x20] sm:$0xff] }
  0x3d   : > { %3659 = vmatprep.subr.msk.bf16.mxu0 %vm4399_vm2, %v3657_v54  ;;  %3678 = vmatpush1.bf16.msra.mxu1 %v3677_v2  ;;  %v1426_v44 = vld [vmem:[%s5814_s27 + $0x28] sm:$0xff]  ;;  %v3695_v45 = vpack.c.bf16 %v1316_v40, %v1315_v39  ;;  %v1317_v46 = vld [vmem:[%s5813_s29 + $0x80] sm:$0xff]  ;;  %v1187_v48 = vld [vmem:[%s4436_s4 + $0x14] sm:$0xff]  ;;  %s3094_s4 = sshll.u32 %s702_s28, 4  ;;  %s5708_s4 = int_to_ptr.vmem [resolvable:$true] %s3094_s4 }
  0x3e   : > { %3159 = vmatmul.mubr.msk.f32.gmra.mrb[4].mxu1 %vm720_vm3, %v711_v6  ;;  %3679 = vmatprep.subr.bf16.mxu1 %v4215_v53  ;;  %v1318_v47 = vld [vmem:[%s5813_s29 + $0x88] sm:$0xff]  ;;  %v3725_v49 = vpack.c.bf16 %v1426_v44, %v1425_v43  ;;  %v1427_v50 = vld [vmem:[%s5814_s27 + $0x30] sm:$0xff]  ;;  %v1428_v51 = vld [vmem:[%s5814_s27 + $0x38] sm:$0xff]  ;;  %s4149_s23 = scalar_lea.vmem %s5708_s4, 16 }
  0x3f   : > { %3184 = vmatmul.mubr.msk.f32.gmra.mrb[2].mxu0 %vm720_vm3, %v954_v63  ;;  %v3698_v52 = vpack.c.bf16 %v1318_v47, %v1317_v46  ;;  %v1319_v54 = vld [vmem:[%s5813_s29 + $0x90] sm:$0xff]  ;;  %v1320_v55 = vld [vmem:[%s5813_s29 + $0x98] sm:$0xff]  ;;  %v3728_v56 = vpack.c.bf16 %v1428_v51, %v1427_v50  ;;  %v1429_v57 = vld [vmem:[%s5814_s27 + $0x40] sm:$0xff]  ;;  %v821_v47 = vlaneseq  ;;  %p4150_p11 = scmp.ne.s32.totalorder %s5708_s4, %s4149_s23 }
  0x40   : > { %1056 = vmatprep.mubr.f32.mxu0 %v4214_v7  ;;  %3662 = vmatpush1.bf16.msk.msra.mxu0 %vm4399_vm2, %v3660_v0  ;;  %v1430_v58 = vld [vmem:[%s5814_s27 + $0x48] sm:$0xff]  ;;  %v3701_v59 = vpack.c.bf16 %v1320_v55, %v1319_v54  ;;  %v1321_v60 = vld [vmem:[%s5813_s29 + $0xa0] sm:$0xff]  ;;  %v1431_v63 = vld [vmem:[%s5814_s27 + $0x50] sm:$0xff] }
  0x41   : > { %3664 = vmatprep.subr.bf16.mxu0 %v3663_v1  ;;  %3681 = vmatpush1.bf16.msra.mxu1 %v3680_v12  ;;  %v1322_v61 = vld [vmem:[%s5813_s29 + $0xa8] sm:$0xff]  ;;  %v3731_v62 = vpack.c.bf16 %v1430_v58, %v1429_v57  ;;  %v1432_v0 = vld [vmem:[%s5814_s27 + $0x58] sm:$0xff]  ;;  %v1323_v2 = vld [vmem:[%s5813_s29 + $0xb0] sm:$0xff]  ;;  %v4794_v50 = vshrl.u32 %v821_v47, 7  ;;  %p4151_p12 = pnand %p4150_p11, %p4376_p5 }
  0x42   : > { %3682 = vmatprep.subr.bf16.mxu1 %v4215_v53  ;;  %v3704_v1 = vpack.c.bf16 %v1322_v61, %v1321_v60  ;;  %v1324_v3 = vld [vmem:[%s5813_s29 + $0xb8] sm:$0xff]  ;;  %v3734_v4 = vpack.c.bf16 %v1432_v0, %v1431_v63  ;;  %v1433_v6 = vld [vmem:[%s5814_s27 + $0x60] sm:$0xff]  ;;  %v1326_v11 = vld [vmem:[%s5813_s29 + $0xc8] sm:$0xff] }
  0x43   : > { %3185 = vmatmul.mubr.msk.f32.gmra.mrb[4].mxu0 %vm720_vm3, %v955_v8  ;;  %v1434_v8 = vld [vmem:[%s5814_s27 + $0x68] sm:$0xff]  ;;  %v3707_v9 = vpack.c.bf16 %v1324_v3, %v1323_v2  ;;  %v1325_v10 = vld [vmem:[%s5813_s29 + $0xc0] sm:$0xff]  ;;  %v1435_v13 = vld [vmem:[%s5814_s27 + $0x70] sm:$0xff]  ;;  %v823_v51 = vsub.s32 0, %v4794_v50  ;;  %v827_v54 = vsub.s32 1, %v4794_v50  ;;  %p4152_p13 = pneg %p4151_p12 }
  0x44   : > { %1160 = vmatprep.mubr.f32.mxu0 %v4214_v7  ;;  %v3737_v12 = vpack.c.bf16 %v1434_v8, %v1433_v6  ;;  %v1436_v14 = vld [vmem:[%s5814_s27 + $0x78] sm:$0xff]  ;;  %v3710_v15 = vpack.c.bf16 %v1326_v11, %v1325_v10  ;;  %v1439_v20 = vld [vmem:[%s5814_s27 + $0x90] sm:$0xff]  ;;  %v1441_v23 = vld [vmem:[%s5814_s27 + $0xa0] sm:$0xff] }
  0x45   : > { %3684 = vmatpush1.bf16.msra.mxu1 %v3683_v21  ;;  %v1440_v21 = vld [vmem:[%s5814_s27 + $0x98] sm:$0xff]  ;;  %v1446_v30 = vld [vmem:[%s5814_s27 + $0xc8] sm:$0xff]  ;;  %v1447_v33 = vld [vmem:[%s5814_s27 + $0xd0] sm:$0xff] }
  0x46   : > { %3685 = vmatprep.subr.bf16.mxu1 %v4215_v53  ;;  %v3746_v22 = vpack.c.bf16 %v1440_v21, %v1439_v20  ;;  %v1444_v27 = vld [vmem:[%s5814_s27 + $0xb8] sm:$0xff]  ;;  %v1329_v37 = vld [vmem:[%s5813_s29 + $0xe0] sm:$0xff] }
  0x47   : > { %3196 = vmatmul.mubr.msk.f32.vlgmr.msra.gmra.mrb[0].mxu0 %vm720_vm3, %v1069_v16  ;;  %v3740_v16 = vpack.c.bf16 %v1436_v14, %v1435_v13  ;;  %v1328_v5 = vld [vmem:[%s5813_s29 + $0xd8] sm:$0xff]  ;;  %v1449_v39 = vld [vmem:[%s5814_s27 + $0xe0] sm:$0xff] }
  0x48   : > { %1166 = vmatprep.mubr.f32.mxu0 %v4214_v7  ;;  %3666 = vmatpush1.bf16.msra.mxu0 %v3665_v17  ;;  %v1437_v17 = vld [vmem:[%s5814_s27 + $0x80] sm:$0xff]  ;;  %v2379_v50 = vld [vmem:[%s5760_s12 + $0x18] sm:$0xff] }
  0x49   : > { %3669 = vmatprep.subr.msk.bf16.mxu0 %vm4399_vm2, %v3667_v18  ;;  %3687 = vmatpush1.bf16.msra.mxu1 %v3686_v26  ;;  %v1438_v18 = vld [vmem:[%s5814_s27 + $0x88] sm:$0xff]  ;;  %v1443_v26 = vld [vmem:[%s5814_s27 + $0xb0] sm:$0xff]  ;;  %v1534_v13 = vld [vmem:[%s5816_s26] sm:$0xff] }
  0x4a   : > { %3688 = vmatprep.subr.bf16.mxu1 %v4215_v53  ;;  %v3743_v19 = vpack.c.bf16 %v1438_v18, %v1437_v17  ;;  %v3752_v28 = vpack.c.bf16 %v1444_v27, %v1443_v26  ;;  %v1732_v47 = vld [vmem:[%s5818_s9 + $0x40] sm:$0xff] }
  0x4b   : > { %3197 = vmatmul.mubr.msk.f32.gmra.mrb[2].mxu0 %vm720_vm3, %v1070_v24  ;;  %v1442_v24 = vld [vmem:[%s5814_s27 + $0xa8] sm:$0xff] }
  0x4c   : > { %1172 = vmatprep.mubr.f32.mxu0 %v4214_v7  ;;  %3672 = vmatpush1.bf16.msk.msra.mxu0 %vm4399_vm2, %v3670_v25  ;;  %v3749_v25 = vpack.c.bf16 %v1442_v24, %v1441_v23 }
  0x4d   : > { %3718 = vmatprep.subr.bf16.mxu0 %v4215_v53  ;;  %3690 = vmatpush1.bf16.msra.mxu1 %v3689_v32  ;;  %v1327_v32 = vld [vmem:[%s5813_s29 + $0xd0] sm:$0xff] }
  0x4e   : > { %3691 = vmatprep.subr.bf16.mxu1 %v4215_v53 }
  0x4f   : > { %3198 = vmatmul.mubr.msk.f32.gmra.mrb[4].mxu0 %vm720_vm3, %v1071_v29  ;;  %v1445_v29 = vld [vmem:[%s5814_s27 + $0xc0] sm:$0xff] }
  0x50   : > { %1276 = vmatprep.mubr.f32.mxu0 %v4214_v7  ;;  %v3755_v31 = vpack.c.bf16 %v1446_v30, %v1445_v29  ;;  %v1535_v30 = vld [vmem:[%s5816_s26 + $0x8] sm:$0xf] }
  0x51   : > { %3693 = vmatpush1.bf16.msra.mxu1 %v3692_v38  ;;  %v1330_v38 = vld [vmem:[%s5813_s29 + $0xe8] sm:$0xff] }
  0x52   : > { %3694 = vmatprep.subr.bf16.mxu1 %v4215_v53  ;;  %v3716_v40 = vpack.c.bf16 %v1330_v38, %v1329_v37  ;;  %v1619_v38 = vld [vmem:[%s5817_s6 + $0x8] sm:$0xf] }
  0x53   : > { %3209 = vmatmul.mubr.msk.f32.vlgmr.msra.gmra.mrb[0].mxu0 %vm720_vm3, %v1185_v34  ;;  %v3713_v34 = vpack.c.bf16 %v1328_v5, %v1327_v32  ;;  %v1725_v32 = vld [vmem:[%s5818_s9 + $0x8] sm:$0xff]  ;;  %v1727_v5 = vld [vmem:[%s5818_s9 + $0x18] sm:$0xff] }
  0x54   : > { %1282 = vmatprep.mubr.f32.mxu0 %v4214_v7  ;;  %3720 = vmatpush1.bf16.msra.mxu0 %v3719_v35  ;;  %v1448_v35 = vld [vmem:[%s5814_s27 + $0xd8] sm:$0xff]  ;;  %v3771_v37 = vpack.c.bf16 %v1727_v5, %v1725_v32  ;;  %v3225_v5 = vld [vmem:[%s5818_s9 + $0xf0] sm:$0xff] }
  0x55   : > { %3721 = vmatprep.subr.bf16.mxu0 %v4215_v53  ;;  %3696 = vmatpush1.bf16.msra.mxu1 %v3695_v45  ;;  %v3758_v36 = vpack.c.bf16 %v1448_v35, %v1447_v33  ;;  %v1724_v33 = vld [vmem:[%s5818_s9] sm:$0xff]  ;;  %v1729_v35 = vld [vmem:[%s5818_s9 + $0x28] sm:$0xff] }
  0x56   : > { %3697 = vmatprep.subr.bf16.mxu1 %v4215_v53 }
  0x57   : > { %3210 = vmatmul.mubr.msk.f32.gmra.mrb[2].mxu0 %vm720_vm3, %v1186_v41  ;;  %v1450_v41 = vld [vmem:[%s5814_s27 + $0xe8] sm:$0xff] }
  0x58   : > { %1288 = vmatprep.mubr.f32.mxu0 %v4214_v7  ;;  %3723 = vmatpush1.bf16.msra.mxu0 %v3722_v42  ;;  %v3761_v42 = vpack.c.bf16 %v1450_v41, %v1449_v39  ;;  %v1728_v41 = vld [vmem:[%s5818_s9 + $0x20] sm:$0xff] }
  0x59   : > { %3724 = vmatprep.subr.bf16.mxu0 %v4215_v53  ;;  %3699 = vmatpush1.bf16.msra.mxu1 %v3698_v52  ;;  %v708_v52 = vld [vmem:[%s5815_s25] sm:$0x3] }
  0x5a   : > { %3700 = vmatprep.subr.bf16.mxu1 %v4215_v53  ;;  %v824_v55 = vrot.slane %v708_v52, %v823_v51 }
  0x5b   : > { %3211 = vmatmul.mubr.msk.f32.gmra.mrb[4].mxu0 %vm720_vm3, %v1187_v48 }
  0x5c   : > { %3726 = vmatpush1.bf16.msra.mxu0 %v3725_v49 }
  0x5d   : > { %3727 = vmatprep.subr.bf16.mxu0 %v4215_v53  ;;  %3702 = vmatpush1.bf16.msra.mxu1 %v3701_v59 }
  0x5e   : > { %3703 = vmatprep.subr.bf16.mxu1 %v4215_v53 }
  0x60   : > { %3729 = vmatpush1.bf16.msra.mxu0 %v3728_v56  ;;  %v828_v56 = vrot.slane %v708_v52, %v827_v54  ;;  %v1739_v52 = vld [vmem:[%s5818_s9 + $0x78] sm:$0xff] }
  0x61   : > { %3730 = vmatprep.subr.bf16.mxu0 %v4215_v53  ;;  %3705 = vmatpush1.bf16.msra.mxu1 %v3704_v1 }
  0x62   : > { %3706 = vmatprep.subr.bf16.mxu1 %v4215_v53 }
  0x64   : > { %3732 = vmatpush1.bf16.msra.mxu0 %v3731_v62 }
  0x65   : > { %3733 = vmatprep.subr.bf16.mxu0 %v4215_v53  ;;  %3708 = vmatpush1.bf16.msra.mxu1 %v3707_v9 }
  0x66   : > { %3709 = vmatprep.subr.bf16.mxu1 %v4215_v53 }
  0x68   : > { %3735 = vmatpush1.bf16.msra.mxu0 %v3734_v4 }
  0x69   : > { %3736 = vmatprep.subr.bf16.mxu0 %v4215_v53  ;;  %3711 = vmatpush1.bf16.msra.mxu1 %v3710_v15 }
  0x6a   : > { %3712 = vmatprep.subr.bf16.mxu1 %v4215_v53 }
  0x6c   : > { %3738 = vmatpush1.bf16.msra.mxu0 %v3737_v12 }
  0x6d   : > { %3739 = vmatprep.subr.bf16.mxu0 %v4215_v53  ;;  %3714 = vmatpush1.bf16.msra.mxu1 %v3713_v34  ;;  %v1726_v34 = vld [vmem:[%s5818_s9 + $0x10] sm:$0xff] }
  0x6e   : > { %3715 = vmatprep.subr.bf16.mxu1 %v4215_v53  ;;  %v3773_v39 = vpack.c.bf16 %v1726_v34, %v1724_v33  ;;  %v2285_v34 = vld [vmem:[%s5759_s11 + $0x18] sm:$0xff] }
  0x70   : > { %3741 = vmatpush1.bf16.msra.mxu0 %v3740_v16 }
  0x71   : > { %3742 = vmatprep.subr.bf16.mxu0 %v4215_v53  ;;  %3717 = vmatpush1.bf16.msra.mxu1 %v3716_v40 }
  0x74   : > { %3744 = vmatpush1.bf16.msra.mxu0 %v3743_v19 }
  0x75   : > { %3745 = vmatprep.subr.bf16.mxu0 %v4215_v53 }
  0x78   : > { %3747 = vmatpush1.bf16.msra.mxu0 %v3746_v22 }
  0x79   : > { %3748 = vmatprep.subr.bf16.mxu0 %v4215_v53 }
  0x7c   : > { %3750 = vmatpush1.bf16.msra.mxu0 %v3749_v25 }
  0x7d   : > { %3751 = vmatprep.subr.bf16.mxu0 %v4215_v53 }
  0x80   : > { %3753 = vmatpush1.bf16.msra.mxu0 %v3752_v28 }
  0x81   : > { %3754 = vmatprep.subr.bf16.mxu0 %v4215_v53 }
  0x84   : > { %3756 = vmatpush1.bf16.msra.mxu0 %v3755_v31  ;;  %v1618_v31 = vld [vmem:[%s5817_s6] sm:$0xff] }
  0x85   : > { %3757 = vmatprep.subr.bf16.mxu0 %v4215_v53 }
  0x88   : > { %3759 = vmatpush1.bf16.msra.mxu0 %v3758_v36  ;;  %v1731_v36 = vld [vmem:[%s5818_s9 + $0x38] sm:$0xff] }
  0x89   : > { %3760 = vmatprep.subr.bf16.mxu0 %v4215_v53  ;;  %v3775_v40 = vpack.c.bf16 %v1731_v36, %v1729_v35  ;;  %v3227_v36 = vld [vmem:[%s5818_s9 + $0x100] sm:$0xff] }
  0x8c   : > { %3762 = vmatpush1.bf16.msra.mxu0 %v3761_v42  ;;  %v1730_v42 = vld [vmem:[%s5818_s9 + $0x30] sm:$0xff] }
  0x8d   : > { %3911 = vmatprep.subr.bf16.mxu0 %v4215_v53 }
 0x109   : > { %v803_v43 = vpop.f32.mrb[0].mxu1 }
 0x10a   : > { %v805_v44 = vpop.f32.mrb[1].mxu1  ;;  %v831_v57 = vadd.f32 %v824_v55, %v803_v43  ;;  %v1733_v43 = vld [vmem:[%s5818_s9 + $0x48] sm:$0xff] }
 0x10b   : > { %v832_v58 = vadd.f32 %v828_v56, %v805_v44  ;;  %v1735_v44 = vld [vmem:[%s5818_s9 + $0x58] sm:$0xff] }
 0x10d   : > { %v809_v45 = vpop.f32.mrb[2].mxu1 }
 0x10e   : > { %v811_v46 = vpop.f32.mrb[3].mxu1  ;;  %v833_v61 = vadd.f32 %v824_v55, %v809_v45  ;;  %v3777_v45 = vpack.c.bf16 %v1730_v42, %v1728_v41  ;;  %v2286_v41 = vld [vmem:[%s5759_s11 + $0x20] sm:$0xff]  ;;  %v2287_v42 = vld [vmem:[%s5759_s11 + $0x28] sm:$0xff] }
 0x10f   : > { %v834_v0 = vadd.f32 %v828_v56, %v811_v46  ;;  %v3779_v46 = vpack.c.bf16 %v1735_v44, %v1733_v43 }
 0x111   : > { %v815_v48 = vpop.f32.mrb[4].mxu1 }
 0x112   : > { %v817_v49 = vpop.f32.mrb[5].mxu1  ;;  %v835_v4 = vadd.f32 %v824_v55, %v815_v48  ;;  %v1734_v48 = vld [vmem:[%s5818_s9 + $0x50] sm:$0xff] }
 0x113   : > { %v836_v8 = vadd.f32 %v828_v56, %v817_v49  ;;  %v1737_v49 = vld [vmem:[%s5818_s9 + $0x68] sm:$0xff]  ;;  %v3781_v55 = vpack.c.bf16 %v1734_v48, %v1732_v47  ;;  %v3229_v47 = vld [vmem:[%s5818_s9 + $0x110] sm:$0xff] }
 0x114   : > { %v3783_v56 = vpack.c.bf16 %v1739_v52, %v1737_v49  ;;  %v3231_v49 = vld [vmem:[%s5818_s9 + $0x120] sm:$0xff]  ;;  %v3234_v52 = vld [vmem:[%s5818_s9 + $0x138] sm:$0xff] }
 0x126   : > { %v1278_v59 = vpop.f32.mrb[0].mxu0 }
 0x127   : > { %v4056_v60 = vadd.f32 %v1278_v59, %v831_v57  ;;  %v1280_v62 = vpop.f32.mrb[1].mxu0  ;;  %v1736_v57 = vld [vmem:[%s5818_s9 + $0x60] sm:$0xff]  ;;  %v1741_v59 = vld [vmem:[%s5818_s9 + $0x88] sm:$0xff] }
 0x128   : > { %v4058_v63 = vadd.f32 %v1280_v62, %v832_v58  ;;  %v1738_v58 = vld [vmem:[%s5818_s9 + $0x70] sm:$0xff] }
 0x12a   : > { %v1284_v1 = vpop.f32.mrb[2].mxu0  ;;  %3212 = vmatprep.mubr.msk.f32.mxu1 %vm1331_vm4, %v4058_v63  ;;  %3215 = vmatprep.mubr.msk.f32.mxu0 %vm1331_vm4, %v4058_v63  ;;  %v1740_v63 = vld [vmem:[%s5818_s9 + $0x80] sm:$0xff] }
 0x12b   : > { %v4060_v2 = vadd.f32 %v1284_v1, %v833_v61  ;;  %v1286_v3 = vpop.f32.mrb[3].mxu0  ;;  %1406 = vmatmul.mubr.f32.vlgmr.msra.gmra.mrb[6].mxu1 %v4056_v60  ;;  %1516 = vmatmul.mubr.f32.vlgmr.msra.gmra.mrb[6].mxu0 %v4056_v60  ;;  %v1743_v60 = vld [vmem:[%s5818_s9 + $0x98] sm:$0xff]  ;;  %v3785_v61 = vpack.c.bf16 %v1738_v58, %v1736_v57 }
 0x12c   : > { %v4062_v6 = vadd.f32 %v1286_v3, %v834_v0  ;;  %v3787_v62 = vpack.c.bf16 %v1743_v60, %v1741_v59  ;;  %v1742_v0 = vld [vmem:[%s5818_s9 + $0x90] sm:$0xff]  ;;  %v1747_v3 = vld [vmem:[%s5818_s9 + $0xb8] sm:$0xff] }
 0x12d   : > { %v3789_v1 = vpack.c.bf16 %v1742_v0, %v1740_v63 }
 0x12e   : > { %v1290_v9 = vpop.f32.mrb[4].mxu0  ;;  %3213 = vmatprep.mubr.msk.f32.mxu1 %vm1331_vm4, %v4062_v6  ;;  %3216 = vmatprep.mubr.msk.f32.mxu0 %vm1331_vm4, %v4062_v6  ;;  %v1744_v6 = vld [vmem:[%s5818_s9 + $0xa0] sm:$0xff] }
 0x12f   : > { %v4064_v10 = vadd.f32 %v1290_v9, %v835_v4  ;;  %v1292_v11 = vpop.f32.mrb[5].mxu0  ;;  %1411 = vmatmul.mubr.f32.gmra.mrb[8].mxu1 %v4060_v2  ;;  %1521 = vmatmul.mubr.f32.gmra.mrb[8].mxu0 %v4060_v2  ;;  %v1745_v2 = vld [vmem:[%s5818_s9 + $0xa8] sm:$0xff] }
 0x130   : > { %v4066_v12 = vadd.f32 %v1292_v11, %v836_v8  ;;  %v3791_v4 = vpack.c.bf16 %v1747_v3, %v1745_v2  ;;  %v1746_v8 = vld [vmem:[%s5818_s9 + $0xb0] sm:$0xff]  ;;  %v1751_v11 = vld [vmem:[%s5818_s9 + $0xd8] sm:$0xff]  ;;  %v3805_v3 = vpack.c.bf16 %v3231_v49, %v3229_v47  ;;  %v3251_v47 = vld [vmem:[%s5818_s9 + $0x1c0] sm:$0xff] }
 0x131   : > { %v3793_v9 = vpack.c.bf16 %v1746_v8, %v1744_v6  ;;  %v2289_v2 = vld [vmem:[%s5759_s11 + $0x38] sm:$0xff]  ;;  %v3233_v6 = vld [vmem:[%s5818_s9 + $0x130] sm:$0xff]  ;;  %v3235_v8 = vld [vmem:[%s5818_s9 + $0x140] sm:$0xff] }
 0x132   : > { %3214 = vmatprep.mubr.msk.f32.mxu1 %vm1331_vm4, %v4066_v12  ;;  %3217 = vmatprep.mubr.msk.f32.mxu0 %vm1331_vm4, %v4066_v12  ;;  %v2298_v49 = vld [vmem:[%s5759_s11 + $0x80] sm:$0xff] }
 0x133   : > { %1416 = vmatmul.mubr.f32.gmra.mrb[10].mxu1 %v4064_v10  ;;  %1526 = vmatmul.mubr.f32.gmra.mrb[10].mxu0 %v4064_v10  ;;  %v1749_v10 = vld [vmem:[%s5818_s9 + $0xc8] sm:$0xff] }
 0x134   : > { %3474 = vmatprep.mubr.msk.f32.mxu1 %vm1536_vm5, %v1534_v13  ;;  %v3795_v12 = vpack.c.bf16 %v1751_v11, %v1749_v10  ;;  %v1748_v13 = vld [vmem:[%s5818_s9 + $0xc0] sm:$0xff] }
 0x1fe   : > { %v1407_v14 = vpop.f32.mrb[6].mxu1  ;;  %v1517_v15 = vpop.f32.mrb[6].mxu0 }
 0x1ff   : > { %v1531_v16 = vmax.f32 %v1407_v14, %v1517_v15  ;;  %v1409_v17 = vpop.f32.mrb[7].mxu1  ;;  %v1519_v18 = vpop.f32.mrb[7].mxu0  ;;  %v1750_v14 = vld [vmem:[%s5818_s9 + $0xd0] sm:$0xff] }
 0x200   : > { %v3797_v15 = vpack.c.bf16 %v1750_v14, %v1748_v13  ;;  %v3226_v17 = vld [vmem:[%s5818_s9 + $0xf8] sm:$0xff]  ;;  %v3228_v18 = vld [vmem:[%s5818_s9 + $0x108] sm:$0xff] }
 0x201   : > { %v3238_v13 = vld [vmem:[%s5818_s9 + $0x158] sm:$0xff]  ;;  %v3240_v14 = vld [vmem:[%s5818_s9 + $0x168] sm:$0xff] }
 0x202   : > { %v1412_v19 = vpop.f32.mrb[8].mxu1  ;;  %v1522_v20 = vpop.f32.mrb[8].mxu0 }
 0x203   : > { %v1532_v21 = vmax.f32 %v1412_v19, %v1522_v20  ;;  %v1414_v22 = vpop.f32.mrb[9].mxu1  ;;  %v1524_v23 = vpop.f32.mrb[9].mxu0  ;;  %v1752_v19 = vld [vmem:[%s5818_s9 + $0xe0] sm:$0xff]  ;;  %v3799_v20 = vpack.c.bf16 %v3228_v18, %v3226_v17  ;;  %v2291_v17 = vld [vmem:[%s5759_s11 + $0x48] sm:$0xff]  ;;  %v3809_v18 = vpack.c.bf16 %v3235_v8, %v3233_v6  ;;  %v3262_v6 = vld [vmem:[%s5818_s9 + $0x210] sm:$0xff] }
 0x204   : > { %v3265_v8 = vld [vmem:[%s5818_s9 + $0x228] sm:$0xff] }
 0x205   : > { %v3763_v24 = vpack.c.bf16 %v1532_v21, %v1531_v16  ;;  %v1753_v16 = vld [vmem:[%s5818_s9 + $0xe8] sm:$0xff] }
 0x206   : > { %v1417_v25 = vpop.f32.mrb[10].mxu1  ;;  %v1527_v26 = vpop.f32.mrb[10].mxu0 }
 0x207   : > { %v1533_v27 = vmax.f32 %v1417_v25, %v1527_v26  ;;  %v1419_v28 = vpop.f32.mrb[11].mxu1  ;;  %v1529_v29 = vpop.f32.mrb[11].mxu0  ;;  %3764 = vmatprep.subr.bf16.mxu1 %v3763_v24  ;;  %v3223_v26 = vld [vmem:[%s5820_s8] ss:$0 sm:$0xff] }
 0x208   : > { %3766 = vmatpush3.bf16.msra.mxu1 %v3763_v24  ;;  %v2282_v29 = vld [vmem:[%s5759_s11] sm:$0xff] }
 0x209   : > { %3472 = vmatprep.subr.mxu1 %v1533_v27 }
 0x20c   : > { %3473 = vmatpush3.msra.mxu1 %v1533_v27 }
 0x20d   : > { %3768 = vmatprep.subr.bf16.mxu1 %v3763_v24  ;;  %3475 = vmatmul.mubr.msk.f32.vlgmr.msra.gmra.mrb[12].mxu1 %vm1536_vm5, %v1535_v30  ;;  %v2283_v30 = vld [vmem:[%s5759_s11 + $0x8] sm:$0xff] }
 0x20e   : > { %3770 = vmatpush3.bf16.msra.mxu1 %v3763_v24  ;;  %3483 = vmatprep.mubr.msk.f32.mxu1 %vm1536_vm5, %v1618_v31  ;;  %v3222_v24 = vld [vmem:[%s5819_s2] ss:$0 sm:$0xff]  ;;  %v2284_v31 = vld [vmem:[%s5759_s11 + $0x10] sm:$0xff]  ;;  %v3912_v33 = vpack.c.bf16 %v2283_v30, %v2282_v29  ;;  %s3389_s2 = sshll.u32 %s4359_s5, 4  ;;  %s4217_s5 = smov [#allocation2]  }
 0x20f   : > { %3481 = vmatprep.subr.mxu1 %v1533_v27  ;;  %v3241_v29 = vld [vmem:[%s5818_s9 + $0x170] sm:$0xff]  ;;  %v3243_v30 = vld [vmem:[%s5818_s9 + $0x180] sm:$0xff]  ;;  %s5706_s6 = scalar_lea.hbm %s5822_s0, %s3389_s2  ;;  %s4153_s8 = sshll.u32 %s4217_s5, 4  ;;  %s4154_s8 = int_to_ptr.vmem [resolvable:$false] %s4153_s8 }
 0x210   : > { %3913 = vmatpush1.bf16.msra.mxu0 %v3912_v33  ;;  %v2294_v33 = vld [vmem:[%s5759_s11 + $0x60] sm:$0xff]  ;;  %p4156_p0 = scmp.lt.s32.totalorder %s5708_s4, %s4154_s8 }
 0x211   : > { %3914 = vmatprep.subr.bf16.mxu0 %v4215_v53 }
 0x212   : > { %3482 = vmatpush3.msra.mxu1 %v1533_v27 }
 0x213   : > { %3484 = vmatmul.mubr.msk.f32.vlgmr.msra.gmra.mrb[14].mxu1 %vm1536_vm5, %v1619_v38  ;;  %3772 = vmatprep.subr.bf16.mxu1 %v3771_v37  ;;  %v3230_v37 = vld [vmem:[%s5818_s9 + $0x118] sm:$0xff]  ;;  %v3232_v38 = vld [vmem:[%s5818_s9 + $0x128] sm:$0xff] }
 0x214   : > { %3774 = vmatpush1.bf16.msra.mxu1 %v3773_v39  ;;  %1822 = vmatprep.mubr.f32.mxu1 %v4214_v7 }
 0x215   : > { %3776 = vmatprep.subr.bf16.mxu1 %v3775_v40  ;;  %v3915_v40 = vpack.c.bf16 %v2285_v34, %v2284_v31  ;;  %v3246_v31 = vld [vmem:[%s5818_s9 + $0x198] sm:$0xff]  ;;  %v2295_v34 = vld [vmem:[%s5759_s11 + $0x68] sm:$0xff] }
 0x217   : > { %3916 = vmatpush1.bf16.msra.mxu0 %v3915_v40  ;;  %v3252_v40 = vld [vmem:[%s5818_s9 + $0x1c8] sm:$0xff] }
 0x218   : > { %3778 = vmatpush1.bf16.msra.mxu1 %v3777_v45  ;;  %v3801_v45 = vpack.c.bf16 %v3227_v36, %v3225_v5  ;;  %3917 = vmatprep.subr.bf16.mxu0 %v4215_v53 }
 0x219   : > { %3780 = vmatprep.subr.bf16.mxu1 %v3779_v46  ;;  %v3803_v46 = vpack.c.bf16 %v3232_v38, %v3230_v37  ;;  %v3245_v37 = vld [vmem:[%s5818_s9 + $0x190] sm:$0xff]  ;;  %v3247_v38 = vld [vmem:[%s5818_s9 + $0x1a0] sm:$0xff] }
 0x21c   : > { %3782 = vmatpush1.bf16.msra.mxu1 %v3781_v55  ;;  %v3236_v55 = vld [vmem:[%s5818_s9 + $0x148] sm:$0xff] }
 0x21d   : > { %3784 = vmatprep.subr.bf16.mxu1 %v3783_v56  ;;  %v3918_v56 = vpack.c.bf16 %v2287_v42, %v2286_v41  ;;  %v3930_v41 = vpack.c.bf16 %v2295_v34, %v2294_v33  ;;  %v2296_v42 = vld [vmem:[%s5759_s11 + $0x70] sm:$0xff]  ;;  %v3281_v34 = vld [vmem:[%s5818_s9 + $0x2a8] sm:$0xff] }
 0x21e   : > { %v3278_v33 = vld [vmem:[%s5818_s9 + $0x290] sm:$0xff] }
 0x21f   : > { %3919 = vmatpush1.bf16.msra.mxu0 %v3918_v56  ;;  %v3254_v56 = vld [vmem:[%s5818_s9 + $0x1d8] sm:$0xff] }
 0x220   : > { %3786 = vmatpush1.bf16.msra.mxu1 %v3785_v61  ;;  %3920 = vmatprep.subr.bf16.mxu0 %v4215_v53 }
 0x221   : > { %3788 = vmatprep.subr.bf16.mxu1 %v3787_v62 }
 0x224   : > { %3790 = vmatpush1.bf16.msra.mxu1 %v3789_v1  ;;  %v2288_v1 = vld [vmem:[%s5759_s11 + $0x30] sm:$0xff] }
 0x225   : > { %3792 = vmatprep.subr.bf16.mxu1 %v3791_v4  ;;  %v3807_v4 = vpack.c.bf16 %v3236_v55, %v3234_v52  ;;  %v2299_v52 = vld [vmem:[%s5759_s11 + $0x88] sm:$0xff] }
 0x228   : > { %3794 = vmatpush1.bf16.msra.mxu1 %v3793_v9 }
 0x229   : > { %3796 = vmatprep.subr.bf16.mxu1 %v3795_v12 }
 0x22c   : > { %3798 = vmatpush1.bf16.msra.mxu1 %v3797_v15  ;;  %v3921_v15 = vpack.c.bf16 %v2289_v2, %v2288_v1 }
 0x22d   : > { %1786 = vmatprep.subr.mxu1 %v1753_v16  ;;  %v2290_v16 = vld [vmem:[%s5759_s11 + $0x40] sm:$0xff] }
 0x22e   : > { %3922 = vmatpush1.bf16.msra.mxu0 %v3921_v15 }
 0x22f   : > { %3923 = vmatprep.subr.bf16.mxu0 %v4215_v53 }
 0x230   : > { %1787 = vmatpush1.msra.mxu1 %v1752_v19  ;;  %v3811_v19 = vpack.c.bf16 %v3240_v14, %v3238_v13  ;;  %v3267_v13 = vld [vmem:[%s5818_s9 + $0x238] sm:$0xff] }
 0x231   : > { %3800 = vmatprep.subr.bf16.mxu1 %v3799_v20  ;;  %v3237_v20 = vld [vmem:[%s5818_s9 + $0x150] sm:$0xff]  ;;  %v3835_v15 = vpack.c.bf16 %v3267_v13, %v3265_v8  ;;  %v3306_v8 = vld [vmem:[%s5818_s9 + $0x368] sm:$0xff] }
 0x2e0   : > { %v3476_v21 = vpop.f32.mrb[12].mxu1 }
 0x2e1   : > { %v1609_v22 = vpop.f32.mrb[13].mxu1 }
 0x2e6   : > { %v3485_v23 = vpop.f32.mrb[14].mxu1 }
 0x2e7   : > { %v1702_v25 = vmax.f32 %v3476_v21, %v3485_v23  ;;  %v1692_v27 = vpop.f32.mrb[15].mxu1  ;;  %v3239_v21 = vld [vmem:[%s5818_s9 + $0x160] sm:$0xff]  ;;  %v3244_v23 = vld [vmem:[%s5818_s9 + $0x188] sm:$0xff] }
 0x2e8   : > { %v1701_v28 = vmax.f32 %v1609_v22, %v1692_v27  ;;  %v3242_v22 = vld [vmem:[%s5818_s9 + $0x178] sm:$0xff]  ;;  %v3813_v27 = vpack.c.bf16 %v3239_v21, %v3237_v20  ;;  %v3268_v21 = vld [vmem:[%s5818_s9 + $0x240] sm:$0xff] }
 0x2e9   : > { %v1711_v32 = vmul.f32 %v3222_v24, %v1702_v25  ;;  %v2292_v25 = vld [vmem:[%s5759_s11 + $0x50] sm:$0xff] }
 0x2ea   : > { %v1710_v35 = vmul.f32 %v3222_v24, %v1701_v28  ;;  %v3924_v24 = vpack.c.bf16 %v2291_v17, %v2290_v16  ;;  %v3815_v28 = vpack.c.bf16 %v3244_v23, %v3242_v22  ;;  %v3264_v16 = vld [vmem:[%s5818_s9 + $0x220] sm:$0xff]  ;;  %v3266_v17 = vld [vmem:[%s5818_s9 + $0x230] sm:$0xff]  ;;  %v3273_v23 = vld [vmem:[%s5818_s9 + $0x268] sm:$0xff] }
 0x2eb   : > { %v1720_v39 = vadd.f32 %v3223_v26, %v1711_v32  ;;  %v3248_v32 = vld [vmem:[%s5818_s9 + $0x1a8] sm:$0xff]  ;;  %v3270_v22 = vld [vmem:[%s5818_s9 + $0x250] sm:$0xff] }
 0x2ec   : > { %v1719_v43 = vadd.f32 %v3223_v26, %v1710_v35  ;;  %v2293_v26 = vld [vmem:[%s5759_s11 + $0x58] sm:$0xff]  ;;  %3925 = vmatpush1.bf16.msra.mxu0 %v3924_v24  ;;  %v3817_v35 = vpack.c.bf16 %v3243_v30, %v3241_v29  ;;  %v3819_v36 = vpack.c.bf16 %v3248_v32, %v3246_v31  ;;  %v3277_v29 = vld [vmem:[%s5818_s9 + $0x288] sm:$0xff] }
 0x2ed   : > { %v1722_v44 = vmax.f32 %v1720_v39, 0.0  ;;  %v3927_v5 = vpack.c.bf16 %v2293_v26, %v2292_v25  ;;  %3926 = vmatprep.subr.bf16.mxu0 %v4215_v53  ;;  %v3250_v39 = vld [vmem:[%s5818_s9 + $0x1b8] sm:$0xff]  ;;  %v3841_v25 = vpack.c.bf16 %v3270_v22, %v3268_v21  ;;  %v3309_v21 = vld [vmem:[%s5818_s9 + $0x380] sm:$0xff] }
 0x2ee   : > { %v1721_v48 = vmax.f32 %v1719_v43, 0.0  ;;  %v2297_v43 = vld [vmem:[%s5759_s11 + $0x78] sm:$0xff] }
 0x2ef   : > { %v1876_v57 = vrot.slane %v1722_v44, 1  ;;  %v1986_v58 = vrot.slane %v1722_v44, 2  ;;  %v2096_v59 = vrot.slane %v1722_v44, 3  ;;  %v2205_v60 = vrot.slane %v1722_v44, 4  ;;  %v3275_v24 = vld [vmem:[%s5818_s9 + $0x278] sm:$0xff] }
 0x2f0   : > { %3224 = vmatmul.mubr.msk.f32.vlgmr.msra.gmra.mrb[16].mxu1 %vm1754_vm6, %v1721_v48  ;;  %v1875_v61 = vrot.slane %v1721_v48, 1  ;;  %v1985_v62 = vrot.slane %v1721_v48, 2  ;;  %v2095_v63 = vrot.slane %v1721_v48, 3  ;;  %v2204_v0 = vrot.slane %v1721_v48, 4  ;;  %3928 = vmatpush1.bf16.msra.mxu0 %v3927_v5  ;;  %v3279_v30 = vld [vmem:[%s5818_s9 + $0x298] sm:$0xff]  ;;  %v3276_v5 = vld [vmem:[%s5818_s9 + $0x280] sm:$0xff] }
 0x2f1   : > { %3802 = vmatpush1.bf16.msra.mxu1 %v3801_v45  ;;  %1944 = vmatprep.mubr.f32.mxu1 %v4214_v7  ;;  %v3821_v44 = vpack.c.bf16 %v3247_v38, %v3245_v37  ;;  %v3823_v45 = vpack.c.bf16 %v3252_v40, %v3250_v39  ;;  %v3933_v48 = vpack.c.bf16 %v2297_v43, %v2296_v42  ;;  %v3280_v38 = vld [vmem:[%s5818_s9 + $0x2a0] sm:$0xff]  ;;  %v3282_v39 = vld [vmem:[%s5818_s9 + $0x2b0] sm:$0xff]  ;;  %v3288_v42 = vld [vmem:[%s5818_s9 + $0x2d8] sm:$0xff] }
 0x2f2   : > { %3804 = vmatprep.subr.bf16.mxu1 %v3803_v46  ;;  %v4989_v9 = vsel %vm1874_vm7, %v1875_v61, %v1876_v57  ;;  %v4992_v10 = vsel %vm1984_vm8, %v1985_v62, %v1986_v58  ;;  %v4995_v11 = vsel %vm2094_vm9, %v2095_v63, %v2096_v59  ;;  %v4998_v12 = vsel %vm730_vm0, %v2204_v0, %v2205_v60  ;;  %v3249_v46 = vld [vmem:[%s5818_s9 + $0x1b0] sm:$0xff]  ;;  %v3257_v57 = vld [vmem:[%s5818_s9 + $0x1e8] sm:$0xff]  ;;  %v3259_v58 = vld [vmem:[%s5818_s9 + $0x1f8] sm:$0xff] }
 0x2f3   : > { %3929 = vmatprep.subr.bf16.mxu0 %v4215_v53  ;;  %v3825_v55 = vpack.c.bf16 %v3251_v47, %v3249_v46  ;;  %v3936_v59 = vpack.c.bf16 %v2299_v52, %v2298_v49  ;;  %v3256_v60 = vld [vmem:[%s5818_s9 + $0x1e0] sm:$0xff]  ;;  %v3258_v61 = vld [vmem:[%s5818_s9 + $0x1f0] sm:$0xff]  ;;  %v3261_v62 = vld [vmem:[%s5818_s9 + $0x208] sm:$0xff]  ;;  %v3827_v1 = vpack.c.bf16 %v3259_v58, %v3257_v57  ;;  %v3843_v26 = vpack.c.bf16 %v3275_v24, %v3273_v23 }
 0x2f4   : > { %3931 = vmatpush1.bf16.msra.mxu0 %v3930_v41  ;;  %v3263_v63 = vld [vmem:[%s5818_s9 + $0x218] sm:$0xff]  ;;  %v3253_v0 = vld [vmem:[%s5818_s9 + $0x1d0] sm:$0xff]  ;;  %v3829_v2 = vpack.c.bf16 %v3258_v61, %v3256_v60  ;;  %v3847_v32 = vpack.c.bf16 %v3279_v30, %v3277_v29  ;;  %v3853_v40 = vpack.c.bf16 %v3282_v39, %v3280_v38  ;;  %v3285_v41 = vld [vmem:[%s5818_s9 + $0x2c8] sm:$0xff] }
 0x2f5   : > { %3806 = vmatpush1.bf16.msra.mxu1 %v3805_v3  ;;  %3932 = vmatprep.subr.bf16.mxu0 %v4215_v53  ;;  %v3831_v3 = vpack.c.bf16 %v3263_v63, %v3261_v62  ;;  %v3290_v43 = vld [vmem:[%s5818_s9 + $0x2e8] sm:$0xff]  ;;  %v3292_v46 = vld [vmem:[%s5818_s9 + $0x2f8] sm:$0xff]  ;;  %v3293_v57 = vld [vmem:[%s5818_s9 + $0x300] sm:$0xff] }
 0x2f6   : > { %3808 = vmatprep.subr.bf16.mxu1 %v3807_v4  ;;  %v3260_v4 = vld [vmem:[%s5818_s9 + $0x200] sm:$0xff]  ;;  %v3294_v47 = vld [vmem:[%s5818_s9 + $0x308] sm:$0xff]  ;;  %v3855_v49 = vpack.c.bf16 %v3290_v43, %v3288_v42  ;;  %v3296_v58 = vld [vmem:[%s5818_s9 + $0x318] sm:$0xff] }
 0x2f7   : > { %v3833_v14 = vpack.c.bf16 %v3262_v6, %v3260_v4  ;;  %v3295_v62 = vld [vmem:[%s5818_s9 + $0x310] sm:$0xff]  ;;  %v3297_v63 = vld [vmem:[%s5818_s9 + $0x320] sm:$0xff]  ;;  %v3304_v6 = vld [vmem:[%s5818_s9 + $0x358] sm:$0xff] }
 0x2f8   : > { %3934 = vmatpush1.bf16.msra.mxu0 %v3933_v48  ;;  %v3284_v48 = vld [vmem:[%s5818_s9 + $0x2c0] sm:$0xff]  ;;  %v3312_v22 = vld [vmem:[%s5818_s9 + $0x398] sm:$0xff]  ;;  %v3314_v23 = vld [vmem:[%s5818_s9 + $0x3a8] sm:$0xff] }
 0x2f9   : > { %3810 = vmatpush1.bf16.msra.mxu1 %v3809_v18  ;;  %3935 = vmatprep.subr.bf16.mxu0 %v4215_v53  ;;  %v3269_v18 = vld [vmem:[%s5818_s9 + $0x248] sm:$0xff]  ;;  %v3301_v4 = vld [vmem:[%s5818_s9 + $0x340] sm:$0xff]  ;;  %v3316_v29 = vld [vmem:[%s5818_s9 + $0x3b8] sm:$0xff] }
 0x2fa   : > { %3812 = vmatprep.subr.bf16.mxu1 %v3811_v19  ;;  %v3837_v19 = vpack.c.bf16 %v3266_v17, %v3264_v16  ;;  %v3305_v16 = vld [vmem:[%s5818_s9 + $0x360] sm:$0xff]  ;;  %v3308_v17 = vld [vmem:[%s5818_s9 + $0x378] sm:$0xff]  ;;  %v3319_v30 = vld [vmem:[%s5818_s9 + $0x3c8] sm:$0xff] }
 0x2fb   : > { %v3322_v39 = vld [vmem:[%s5818_s9 + $0x3e0] sm:$0xff]  ;;  %v3329_v42 = vld [vmem:[%s5818_s9 + $0x418] sm:$0xff] }
 0x2fc   : > { %3937 = vmatpush1.bf16.msra.mxu0 %v3936_v59  ;;  %v3298_v59 = vld [vmem:[%s5818_s9 + $0x328] sm:$0xff] }
 0x2fd   : > { %3814 = vmatpush1.bf16.msra.mxu1 %v3813_v27  ;;  %3938 = vmatprep.subr.bf16.mxu0 %v4215_v53  ;;  %v3272_v27 = vld [vmem:[%s5818_s9 + $0x260] sm:$0xff]  ;;  %v3863_v61 = vpack.c.bf16 %v3298_v59, %v3296_v58 }
 0x2fe   : > { %3816 = vmatprep.subr.bf16.mxu1 %v3815_v28  ;;  %v3274_v28 = vld [vmem:[%s5818_s9 + $0x270] sm:$0xff] }
 0x2ff   : > { %v3845_v31 = vpack.c.bf16 %v3274_v28, %v3272_v27  ;;  %v3313_v27 = vld [vmem:[%s5818_s9 + $0x3a0] sm:$0xff] }
 0x301   : > { %3818 = vmatpush1.bf16.msra.mxu1 %v3817_v35  ;;  %v3283_v35 = vld [vmem:[%s5818_s9 + $0x2b8] sm:$0xff] }
 0x302   : > { %3820 = vmatprep.subr.bf16.mxu1 %v3819_v36  ;;  %v3849_v36 = vpack.c.bf16 %v3278_v33, %v3276_v5  ;;  %v3851_v37 = vpack.c.bf16 %v3283_v35, %v3281_v34  ;;  %v3320_v5 = vld [vmem:[%s5818_s9 + $0x3d0] sm:$0xff]  ;;  %v3323_v33 = vld [vmem:[%s5818_s9 + $0x3e8] sm:$0xff]  ;;  %v3325_v34 = vld [vmem:[%s5818_s9 + $0x3f8] sm:$0xff] }
 0x303   : > { %v3315_v35 = vld [vmem:[%s5818_s9 + $0x3b0] sm:$0xff]  ;;  %v3887_v38 = vpack.c.bf16 %v3325_v34, %v3323_v33  ;;  %v2384_v34 = vld [vmem:[%s5760_s12 + $0x40] sm:$0xff] }
 0x305   : > { %3822 = vmatpush1.bf16.msra.mxu1 %v3821_v44  ;;  %v3287_v44 = vld [vmem:[%s5818_s9 + $0x2d0] sm:$0xff] }
 0x306   : > { %3824 = vmatprep.subr.bf16.mxu1 %v3823_v45  ;;  %v3289_v45 = vld [vmem:[%s5818_s9 + $0x2e0] sm:$0xff] }
 0x307   : > { %v3857_v52 = vpack.c.bf16 %v3289_v45, %v3287_v44  ;;  %v3326_v45 = vld [vmem:[%s5818_s9 + $0x400] sm:$0xff] }
 0x309   : > { %3826 = vmatpush1.bf16.msra.mxu1 %v3825_v55  ;;  %v3859_v55 = vpack.c.bf16 %v3294_v47, %v3292_v46  ;;  %v3328_v46 = vld [vmem:[%s5818_s9 + $0x410] sm:$0xff]  ;;  %v3331_v47 = vld [vmem:[%s5818_s9 + $0x428] sm:$0xff] }
 0x30a   : > { %1908 = vmatprep.subr.mxu1 %v3254_v56  ;;  %v3291_v56 = vld [vmem:[%s5818_s9 + $0x2f0] sm:$0xff] }
 0x30b   : > { %v3861_v60 = vpack.c.bf16 %v3293_v57, %v3291_v56  ;;  %v3335_v56 = vld [vmem:[%s5818_s9 + $0x448] sm:$0xff]  ;;  %v3337_v57 = vld [vmem:[%s5818_s9 + $0x458] sm:$0xff] }
 0x30c   : > { %v3899_v59 = vpack.c.bf16 %v3337_v57, %v3335_v56 }
 0x30d   : > { %1909 = vmatpush1.msra.mxu1 %v3253_v0  ;;  %v3300_v0 = vld [vmem:[%s5818_s9 + $0x338] sm:$0xff] }
 0x30e   : > { %3255 = vmatmul.mubr.msk.f32.vlgmr.msra.gmra.mrb[16].mxu1 %vm1754_vm6, %v4989_v9  ;;  %3828 = vmatprep.subr.bf16.mxu1 %v3827_v1  ;;  %v3271_v9 = vld [vmem:[%s5818_s9 + $0x258] sm:$0xff]  ;;  %v3865_v1 = vpack.c.bf16 %v3297_v63, %v3295_v62  ;;  %v3339_v62 = vld [vmem:[%s5818_s9 + $0x468] sm:$0xff] }
 0x30f   : > { %3830 = vmatpush1.bf16.msra.mxu1 %v3829_v2  ;;  %2054 = vmatprep.mubr.f32.mxu1 %v4214_v7  ;;  %v3839_v20 = vpack.c.bf16 %v3271_v9, %v3269_v18  ;;  %v3310_v18 = vld [vmem:[%s5818_s9 + $0x388] sm:$0xff]  ;;  %v3341_v63 = vld [vmem:[%s5818_s9 + $0x478] sm:$0xff] }
 0x310   : > { %3832 = vmatprep.subr.bf16.mxu1 %v3831_v3  ;;  %v3299_v3 = vld [vmem:[%s5818_s9 + $0x330] sm:$0xff] }
 0x311   : > { %v3869_v13 = vpack.c.bf16 %v3301_v4, %v3299_v3  ;;  %v3343_v3 = vld [vmem:[%s5818_s9 + $0x488] sm:$0xff]  ;;  %v3345_v4 = vld [vmem:[%s5818_s9 + $0x498] sm:$0xff] }
 0x313   : > { %3834 = vmatpush1.bf16.msra.mxu1 %v3833_v14  ;;  %v3871_v14 = vpack.c.bf16 %v3306_v8, %v3304_v6  ;;  %v3907_v8 = vpack.c.bf16 %v3345_v4, %v3343_v3  ;;  %v2639_v3 = vld [vmem:[%s5765_s17 + $0x20] sm:$0xff]  ;;  %v2640_v4 = vld [vmem:[%s5765_s17 + $0x28] sm:$0xff] }
 0x314   : > { %3836 = vmatprep.subr.bf16.mxu1 %v3835_v15  ;;  %v3303_v15 = vld [vmem:[%s5818_s9 + $0x350] sm:$0xff] }
 0x315   : > { %v3873_v9 = vpack.c.bf16 %v3305_v16, %v3303_v15  ;;  %v3347_v16 = vld [vmem:[%s5818_s9 + $0x4a8] sm:$0xff] }
 0x317   : > { %3838 = vmatpush1.bf16.msra.mxu1 %v3837_v19  ;;  %v3875_v19 = vpack.c.bf16 %v3310_v18, %v3308_v17  ;;  %v3346_v17 = vld [vmem:[%s5818_s9 + $0x4a0] sm:$0xff]  ;;  %v2300_v18 = vld [vmem:[%s5759_s11 + $0x90] sm:$0xff] }
 0x318   : > { %3840 = vmatprep.subr.bf16.mxu1 %v3839_v20  ;;  %v3307_v20 = vld [vmem:[%s5818_s9 + $0x370] sm:$0xff] }
 0x319   : > { %v3877_v24 = vpack.c.bf16 %v3309_v21, %v3307_v20  ;;  %v1723_v20 = vld [vmem:[%s5758_s10] sm:$0x3] }
 0x31a   : > { %v1833_v21 = vrot.slane %v1723_v20, %v823_v51 }
 0x31b   : > { %3842 = vmatpush1.bf16.msra.mxu1 %v3841_v25  ;;  %v3879_v25 = vpack.c.bf16 %v3314_v23, %v3312_v22  ;;  %v2376_v22 = vld [vmem:[%s5760_s12] sm:$0xff]  ;;  %v2377_v23 = vld [vmem:[%s5760_s12 + $0x8] sm:$0xff] }
 0x31c   : > { %3844 = vmatprep.subr.bf16.mxu1 %v3843_v26  ;;  %v3311_v26 = vld [vmem:[%s5818_s9 + $0x390] sm:$0xff] }
 0x31d   : > { %v3881_v28 = vpack.c.bf16 %v3313_v27, %v3311_v26  ;;  %v3942_v27 = vpack.c.bf16 %v2377_v23, %v2376_v22  ;;  %v2984_v22 = vld [vmem:[%s5769_s21 + $0x20] sm:$0xff]  ;;  %v2985_v23 = vld [vmem:[%s5769_s21 + $0x28] sm:$0xff] }
 0x31f   : > { %3846 = vmatpush1.bf16.msra.mxu1 %v3845_v31  ;;  %v3321_v31 = vld [vmem:[%s5818_s9 + $0x3d8] sm:$0xff] }
 0x320   : > { %3848 = vmatprep.subr.bf16.mxu1 %v3847_v32  ;;  %v3318_v32 = vld [vmem:[%s5818_s9 + $0x3c0] sm:$0xff] }
 0x323   : > { %3850 = vmatpush1.bf16.msra.mxu1 %v3849_v36  ;;  %v3883_v36 = vpack.c.bf16 %v3321_v31, %v3319_v30  ;;  %v2381_v30 = vld [vmem:[%s5760_s12 + $0x28] sm:$0xff] }
 0x324   : > { %3852 = vmatprep.subr.bf16.mxu1 %v3851_v37  ;;  %v3885_v37 = vpack.c.bf16 %v3320_v5, %v3318_v32  ;;  %v2382_v32 = vld [vmem:[%s5760_s12 + $0x30] sm:$0xff]  ;;  %v2383_v5 = vld [vmem:[%s5760_s12 + $0x38] sm:$0xff] }
 0x325   : > { %v3951_v33 = vpack.c.bf16 %v2383_v5, %v2382_v32 }
 0x327   : > { %3854 = vmatpush1.bf16.msra.mxu1 %v3853_v40  ;;  %v3324_v40 = vld [vmem:[%s5818_s9 + $0x3f0] sm:$0xff] }
 0x328   : > { %2018 = vmatprep.subr.mxu1 %v3285_v41  ;;  %v3327_v41 = vld [vmem:[%s5818_s9 + $0x408] sm:$0xff]  ;;  %v3889_v43 = vpack.c.bf16 %v3324_v40, %v3322_v39  ;;  %v2388_v40 = vld [vmem:[%s5760_s12 + $0x60] sm:$0xff] }
 0x329   : > { %v3891_v44 = vpack.c.bf16 %v3329_v42, %v3327_v41  ;;  %v2389_v41 = vld [vmem:[%s5760_s12 + $0x68] sm:$0xff] }
 0x32a   : > { %v3960_v42 = vpack.c.bf16 %v2389_v41, %v2388_v40 }
 0x32b   : > { %2019 = vmatpush1.msra.mxu1 %v3284_v48  ;;  %v3893_v48 = vpack.c.bf16 %v3328_v46, %v3326_v45  ;;  %v2392_v46 = vld [vmem:[%s5760_s12 + $0x80] sm:$0xff] }
 0x32c   : > { %3286 = vmatmul.mubr.msk.f32.vlgmr.msra.gmra.mrb[16].mxu1 %vm1754_vm6, %v4992_v10  ;;  %3856 = vmatprep.subr.bf16.mxu1 %v3855_v49  ;;  %v3302_v10 = vld [vmem:[%s5818_s9 + $0x348] sm:$0xff] }
 0x32d   : > { %3858 = vmatpush1.bf16.msra.mxu1 %v3857_v52  ;;  %2164 = vmatprep.mubr.f32.mxu1 %v4214_v7  ;;  %v3867_v2 = vpack.c.bf16 %v3302_v10, %v3300_v0  ;;  %v3330_v52 = vld [vmem:[%s5818_s9 + $0x420] sm:$0xff]  ;;  %v3903_v10 = vpack.c.bf16 %v3341_v63, %v3339_v62  ;;  %v2636_v62 = vld [vmem:[%s5765_s17 + $0x8] sm:$0xff] }
 0x32e   : > { %3860 = vmatprep.subr.bf16.mxu1 %v3859_v55  ;;  %v3332_v55 = vld [vmem:[%s5818_s9 + $0x430] sm:$0xff]  ;;  %v2542_v63 = vld [vmem:[%s5762_s14] sm:$0xf] }
 0x32f   : > { %v3897_v58 = vpack.c.bf16 %v3332_v55, %v3330_v52 }
 0x331   : > { %3862 = vmatpush1.bf16.msra.mxu1 %v3861_v60  ;;  %v3334_v60 = vld [vmem:[%s5818_s9 + $0x440] sm:$0xff] }
 0x332   : > { %3864 = vmatprep.subr.bf16.mxu1 %v3863_v61  ;;  %v3336_v61 = vld [vmem:[%s5818_s9 + $0x450] sm:$0xff] }
 0x333   : > { %v3901_v0 = vpack.c.bf16 %v3336_v61, %v3334_v60  ;;  %v2467_v60 = vld [vmem:[%s5761_s13] sm:$0xf] }
 0x334   : > { %v2635_v61 = vld [vmem:[%s5765_s17] sm:$0xff] }
 0x335   : > { %3866 = vmatpush1.bf16.msra.mxu1 %v3865_v1  ;;  %v3338_v1 = vld [vmem:[%s5818_s9 + $0x460] sm:$0xff] }
 0x336   : > { %3868 = vmatprep.subr.bf16.mxu1 %v3867_v2  ;;  %v3340_v2 = vld [vmem:[%s5818_s9 + $0x470] sm:$0xff] }
 0x337   : > { %v3905_v6 = vpack.c.bf16 %v3340_v2, %v3338_v1  ;;  %v2638_v1 = vld [vmem:[%s5765_s17 + $0x18] sm:$0xff] }
 0x339   : > { %3870 = vmatpush1.bf16.msra.mxu1 %v3869_v13  ;;  %v3342_v13 = vld [vmem:[%s5818_s9 + $0x480] sm:$0xff] }
 0x33a   : > { %3872 = vmatprep.subr.bf16.mxu1 %v3871_v14  ;;  %v3344_v14 = vld [vmem:[%s5818_s9 + $0x490] sm:$0xff] }
 0x33b   : > { %v3909_v15 = vpack.c.bf16 %v3344_v14, %v3342_v13  ;;  %v2642_v13 = vld [vmem:[%s5765_s17 + $0x38] sm:$0xff] }
 0x33d   : > { %3874 = vmatpush1.bf16.msra.mxu1 %v3873_v9  ;;  %v2301_v9 = vld [vmem:[%s5759_s11 + $0x98] sm:$0xff] }
 0x33e   : > { %3876 = vmatprep.subr.bf16.mxu1 %v3875_v19  ;;  %v3939_v19 = vpack.c.bf16 %v2301_v9, %v2300_v18  ;;  %v2980_v18 = vld [vmem:[%s5769_s21] sm:$0xff]  ;;  %v2981_v9 = vld [vmem:[%s5769_s21 + $0x8] sm:$0xff] }
 0x340   : > { %3940 = vmatpush1.bf16.msra.mxu0 %v3939_v19  ;;  %v2982_v19 = vld [vmem:[%s5769_s21 + $0x10] sm:$0xff] }
 0x341   : > { %3878 = vmatpush1.bf16.msra.mxu1 %v3877_v24  ;;  %3941 = vmatprep.subr.bf16.mxu0 %v4215_v53 }
 0x342   : > { %3880 = vmatprep.subr.bf16.mxu1 %v3879_v25 }
 0x345   : > { %3882 = vmatpush1.bf16.msra.mxu1 %v3881_v28 }
 0x346   : > { %2128 = vmatprep.subr.mxu1 %v3316_v29  ;;  %v2380_v29 = vld [vmem:[%s5760_s12 + $0x20] sm:$0xff] }
 0x347   : > { %v3948_v31 = vpack.c.bf16 %v2381_v30, %v2380_v29  ;;  %v2991_v29 = vld [vmem:[%s5769_s21 + $0x58] sm:$0xff] }
 0x349   : > { %2129 = vmatpush1.msra.mxu1 %v3315_v35  ;;  %v2385_v35 = vld [vmem:[%s5760_s12 + $0x48] sm:$0xff] }
 0x34a   : > { %3317 = vmatmul.mubr.msk.f32.vlgmr.msra.gmra.mrb[16].mxu1 %vm1754_vm6, %v4995_v11  ;;  %3884 = vmatprep.subr.bf16.mxu1 %v3883_v36  ;;  %v3333_v11 = vld [vmem:[%s5818_s9 + $0x438] sm:$0xff]  ;;  %v3954_v36 = vpack.c.bf16 %v2385_v35, %v2384_v34  ;;  %s4155_s9 = scalar_lea.vmem %s4154_s8, 32 }
 0x34b   : > { %3886 = vmatpush1.bf16.msra.mxu1 %v3885_v37  ;;  %2273 = vmatprep.mubr.f32.mxu1 %v4214_v7  ;;  %v3895_v49 = vpack.c.bf16 %v3333_v11, %v3331_v47  ;;  %v2386_v37 = vld [vmem:[%s5760_s12 + $0x50] sm:$0xff]  ;;  %v2393_v47 = vld [vmem:[%s5760_s12 + $0x88] sm:$0xff]  ;;  %p4157_p1 = scmp.lt.s32.totalorder %s4155_s9, %s4149_s23 }
 0x34c   : > { %3888 = vmatprep.subr.bf16.mxu1 %v3887_v38  ;;  %v2387_v38 = vld [vmem:[%s5760_s12 + $0x58] sm:$0xff]  ;;  %v3966_v11 = vpack.c.bf16 %v2393_v47, %v2392_v46  ;;  %v3360_v46 = vld [vmem:[%s5765_s17 + $0x70] sm:$0xff] }
 0x34d   : > { %v3957_v39 = vpack.c.bf16 %v2387_v38, %v2386_v37  ;;  %v3356_v38 = vld [vmem:[%s5765_s17 + $0x50] sm:$0xff]  ;;  %v3361_v47 = vld [vmem:[%s5765_s17 + $0x78] sm:$0xff]  ;;  %p4158_p2 = por %p4157_p1, %p4156_p0 }
 0x34f   : > { %3890 = vmatpush1.bf16.msra.mxu1 %v3889_v43  ;;  %v2390_v43 = vld [vmem:[%s5760_s12 + $0x70] sm:$0xff]  ;;  %p4159_p3 = pnand %p4158_p2, %p4152_p13 }
 0x350   : > { %3892 = vmatprep.subr.bf16.mxu1 %v3891_v44  ;;  %v2391_v44 = vld [vmem:[%s5760_s12 + $0x78] sm:$0xff] }
 0x351   : > { %v3963_v45 = vpack.c.bf16 %v2391_v44, %v2390_v43  ;;  %v3358_v43 = vld [vmem:[%s5765_s17 + $0x60] sm:$0xff]  ;;  %v3359_v44 = vld [vmem:[%s5765_s17 + $0x68] sm:$0xff] }
 0x353   : > { %3894 = vmatpush1.bf16.msra.mxu1 %v3893_v48  ;;  %v2394_v48 = vld [vmem:[%s5760_s12 + $0x90] sm:$0xff] }
 0x354   : > { %3896 = vmatprep.subr.bf16.mxu1 %v3895_v49  ;;  %v2395_v49 = vld [vmem:[%s5760_s12 + $0x98] sm:$0xff] }
 0x355   : > { %v3969_v52 = vpack.c.bf16 %v2395_v49, %v2394_v48  ;;  %v3362_v48 = vld [vmem:[%s5765_s17 + $0x80] sm:$0xff]  ;;  %v3363_v49 = vld [vmem:[%s5765_s17 + $0x88] sm:$0xff] }
 0x357   : > { %3898 = vmatpush1.bf16.msra.mxu1 %v3897_v58 }
 0x358   : > { %3900 = vmatprep.subr.bf16.mxu1 %v3899_v59 }
 0x35b   : > { %3902 = vmatpush1.bf16.msra.mxu1 %v3901_v0  ;;  %v3972_v0 = vpack.c.bf16 %v2636_v62, %v2635_v61  ;;  %v3369_v62 = vld [vmem:[%s5765_s17 + $0xb0] sm:$0xff] }
 0x35c   : > { %3904 = vmatprep.subr.bf16.mxu1 %v3903_v10  ;;  %v2637_v10 = vld [vmem:[%s5765_s17 + $0x10] sm:$0xff] }
 0x35d   : > { %v3975_v2 = vpack.c.bf16 %v2638_v1, %v2637_v10  ;;  %v3371_v10 = vld [vmem:[%s5765_s17 + $0xc0] sm:$0xff]  ;;  %v3372_v1 = vld [vmem:[%s5765_s17 + $0xc8] sm:$0xff] }
 0x35f   : > { %3906 = vmatpush1.bf16.msra.mxu1 %v3905_v6  ;;  %v3978_v6 = vpack.c.bf16 %v2640_v4, %v2639_v3  ;;  %v3373_v3 = vld [vmem:[%s5765_s17 + $0xd0] sm:$0xff]  ;;  %v3374_v4 = vld [vmem:[%s5765_s17 + $0xd8] sm:$0xff] }
 0x360   : > { %3908 = vmatprep.subr.bf16.mxu1 %v3907_v8  ;;  %v2641_v8 = vld [vmem:[%s5765_s17 + $0x30] sm:$0xff] }
 0x361   : > { %v3981_v14 = vpack.c.bf16 %v2642_v13, %v2641_v8  ;;  %v3375_v8 = vld [vmem:[%s5765_s17 + $0xe0] sm:$0xff]  ;;  %v3376_v13 = vld [vmem:[%s5765_s17 + $0xe8] sm:$0xff] }
 0x363   : > { %3910 = vmatpush1.bf16.msra.mxu1 %v3909_v15  ;;  %v2643_v15 = vld [vmem:[%s5765_s17 + $0x40] sm:$0xff] }
 0x364   : > { %2237 = vmatprep.subr.mxu1 %v3347_v16  ;;  %v2644_v16 = vld [vmem:[%s5765_s17 + $0x48] sm:$0xff] }
 0x367   : > { %2238 = vmatpush1.msra.mxu1 %v3346_v17  ;;  %v3984_v17 = vpack.c.bf16 %v2644_v16, %v2643_v15  ;;  %v3378_v15 = vld [vmem:[%s5765_s17 + $0xf0] sm:$0xff]  ;;  %v3379_v16 = vld [vmem:[%s5765_s17 + $0xf8] sm:$0xff] }
 0x368   : > { %3348 = vmatmul.mubr.msk.f32.vlgmr.msra.gmra.mrb[16].mxu1 %vm1754_vm6, %v4998_v12  ;;  %4031 = vmatprep.subr.bf16.mxu1 %v4215_v53  ;;  %v1837_v12 = vrot.slane %v1723_v20, %v827_v54  ;;  %v2378_v54 = vld [vmem:[%s5760_s12 + $0x10] sm:$0xff]  ;;  %v4032_v20 = vpack.c.bf16 %v2981_v9, %v2980_v18  ;;  %v3380_v9 = vld [vmem:[%s5765_s17 + $0x100] sm:$0xff] }
 0x369   : > { %v3945_v51 = vpack.c.bf16 %v2379_v50, %v2378_v54  ;;  %3620 = vmatprep.mubr.msk.f32.mxu1 %vm4216_vm11, %v4214_v7  ;;  %v2989_v54 = vld [vmem:[%s5769_s21 + $0x48] sm:$0xff] }
 0x36a   : > { %4033 = vmatpush3.bf16.msra.mxu1 %v4032_v20 }
 0x36b   : > { %4034 = vmatprep.subr.bf16.mxu1 %v4215_v53 }
 0x43b   : > { %v2275_v24 = vpop.f32.mrb[16].mxu1 }
 0x43c   : > { %v2277_v25 = vpop.f32.mrb[17].mxu1  ;;  %v4067_v28 = vadd.f32 %v2275_v24, %v1833_v21  ;;  %v4038_v24 = vpack.c.bf16 %v2985_v23, %v2984_v22  ;;  %v3384_v23 = vld [vmem:[%s5765_s17 + $0x120] sm:$0xff] }
 0x43d   : > { %v4068_v26 = vadd.f32 %v2277_v25, %v1837_v12  ;;  %v2983_v12 = vld [vmem:[%s5769_s21 + $0x18] sm:$0xff]  ;;  %v2986_v25 = vld [vmem:[%s5769_s21 + $0x30] sm:$0xff] }
 0x43e   : > { %v4035_v21 = vpack.c.bf16 %v2983_v12, %v2982_v19  ;;  %v3381_v19 = vld [vmem:[%s5765_s17 + $0x108] sm:$0xff]  ;;  %v3382_v12 = vld [vmem:[%s5765_s17 + $0x110] sm:$0xff] }
 0x43f   : > { %3349 = vmatprep.mubr.msk.f32.mxu0 %vm2302_vm10, %v4068_v26  ;;  %v4020_v20 = vpack.c.bf16 %v3381_v19, %v3380_v9 }
 0x440   : > { %2371 = vmatmul.mubr.f32.vlgmr.msra.gmra.mrb[12].mxu0 %v4067_v28  ;;  %4036 = vmatpush3.bf16.msra.mxu1 %v4035_v21  ;;  %v3383_v21 = vld [vmem:[%s5765_s17 + $0x118] sm:$0xff] }
 0x441   : > { %3943 = vmatpush1.bf16.msra.mxu0 %v3942_v27  ;;  %3350 = vmatprep.mubr.msk.f32.mxu0 %vm2302_vm10, %v4068_v26  ;;  %v2987_v26 = vld [vmem:[%s5769_s21 + $0x38] sm:$0xff]  ;;  %v4023_v22 = vpack.c.bf16 %v3383_v21, %v3382_v12 }
 0x442   : > { %3944 = vmatprep.subr.bf16.mxu0 %v4215_v53  ;;  %4037 = vmatprep.subr.bf16.mxu1 %v4215_v53  ;;  %v4041_v27 = vpack.c.bf16 %v2987_v26, %v2986_v25  ;;  %v3386_v25 = vld [vmem:[%s5765_s17 + $0x130] sm:$0xff]  ;;  %v3387_v26 = vld [vmem:[%s5765_s17 + $0x138] sm:$0xff] }
 0x444   : > { %4039 = vmatpush3.bf16.msra.mxu1 %v4038_v24 }
 0x445   : > { %3946 = vmatpush1.bf16.msra.mxu0 %v3945_v51  ;;  %4040 = vmatprep.subr.bf16.mxu1 %v4215_v53  ;;  %v2990_v51 = vld [vmem:[%s5769_s21 + $0x50] sm:$0xff] }
 0x446   : > { %3947 = vmatprep.subr.bf16.mxu0 %v4215_v53  ;;  %v4047_v30 = vpack.c.bf16 %v2991_v29, %v2990_v51  ;;  %v2994_v29 = vld [vmem:[%s5769_s21 + $0x70] sm:$0xff] }
 0x448   : > { %4042 = vmatpush3.bf16.msra.mxu1 %v4041_v27  ;;  %v4029_v27 = vpack.c.bf16 %v3387_v26, %v3386_v25 }
 0x449   : > { %3949 = vmatpush1.bf16.msra.mxu0 %v3948_v31  ;;  %4043 = vmatprep.subr.bf16.mxu1 %v4215_v53 }
 0x44a   : > { %3950 = vmatprep.subr.bf16.mxu0 %v4215_v53 }
 0x44d   : > { %3952 = vmatpush1.bf16.msra.mxu0 %v3951_v33  ;;  %v3353_v33 = vld [vmem:[%s5763_s15] ss:$0 sm:$0xff] }
 0x44e   : > { %3953 = vmatprep.subr.bf16.mxu0 %v4215_v53 }
 0x451   : > { %3955 = vmatpush1.bf16.msra.mxu0 %v3954_v36  ;;  %v3354_v36 = vld [vmem:[%s5764_s16] ss:$0 sm:$0xff] }
 0x452   : > { %3956 = vmatprep.subr.bf16.mxu0 %v4215_v53 }
 0x455   : > { %3958 = vmatpush1.bf16.msra.mxu0 %v3957_v39  ;;  %v3357_v39 = vld [vmem:[%s5765_s17 + $0x58] sm:$0xff] }
 0x456   : > { %3959 = vmatprep.subr.bf16.mxu0 %v4215_v53  ;;  %v3987_v41 = vpack.c.bf16 %v3357_v39, %v3356_v38  ;;  %v2996_v39 = vld [vmem:[%s5770_s22] sm:$0x1] }
 0x459   : > { %3961 = vmatpush1.bf16.msra.mxu0 %v3960_v42 }
 0x45a   : > { %3962 = vmatprep.subr.bf16.mxu0 %v4215_v53 }
 0x45d   : > { %3964 = vmatpush1.bf16.msra.mxu0 %v3963_v45  ;;  %v3990_v45 = vpack.c.bf16 %v3359_v44, %v3358_v43 }
 0x45e   : > { %3965 = vmatprep.subr.bf16.mxu0 %v4215_v53 }
 0x461   : > { %3967 = vmatpush1.bf16.msra.mxu0 %v3966_v11  ;;  %v3993_v11 = vpack.c.bf16 %v3361_v47, %v3360_v46 }
 0x462   : > { %3968 = vmatprep.subr.bf16.mxu0 %v4215_v53 }
 0x465   : > { %3970 = vmatpush1.bf16.msra.mxu0 %v3969_v52  ;;  %v3996_v52 = vpack.c.bf16 %v3363_v49, %v3362_v48 }
 0x466   : > { %3486 = vmatprep.subr.mxu0 %v4214_v7 }
 0x468   : > { %2461 = vmatmul.mubr.f32.vlgmr.msra.gmra.mrb[14].mxu0 %v4067_v28  ;;  %v2988_v28 = vld [vmem:[%s5769_s21 + $0x40] sm:$0xff] }
 0x469   : > { %3488 = vmatprep.mubr.msk.f32.mxu0 %vm4216_vm11, %v4214_v7  ;;  %v4044_v50 = vpack.c.bf16 %v2989_v54, %v2988_v28  ;;  %v2992_v54 = vld [vmem:[%s5769_s21 + $0x60] sm:$0xff] }
 0x46b   : > { %4045 = vmatpush3.bf16.msra.mxu1 %v4044_v50  ;;  %v2993_v50 = vld [vmem:[%s5769_s21 + $0x68] sm:$0xff] }
 0x46c   : > { %4046 = vmatprep.subr.bf16.mxu1 %v4215_v53  ;;  %v4050_v51 = vpack.c.bf16 %v2993_v50, %v2992_v54 }
 0x46f   : > { %4048 = vmatpush3.bf16.msra.mxu1 %v4047_v30  ;;  %v2995_v30 = vld [vmem:[%s5769_s21 + $0x78] sm:$0xff] }
 0x470   : > { %4049 = vmatprep.subr.bf16.mxu1 %v4215_v53 }
 0x473   : > { %4051 = vmatpush3.bf16.msra.mxu1 %v4050_v51 }
 0x474   : > { %4052 = vmatprep.subr.bf16.mxu1 %v4215_v53 }
 0x513   : > { %v2372_v55 = vpop.f32.mrb[12].mxu0 }
 0x514   : > { %v2374_v56 = vpop.f32.mrb[13].mxu0 }
 0x515   : > { %v3365_v56 = vld [vmem:[%s5765_s17 + $0x98] sm:$0xff] }
 0x53b   : > { %v2462_v57 = vpop.f32.mrb[14].mxu0 }
 0x53c   : > { %v2466_v58 = vmax.f32 %v2372_v55, %v2462_v57  ;;  %v2464_v59 = vpop.f32.mrb[15].mxu0  ;;  %v3364_v55 = vld [vmem:[%s5765_s17 + $0x90] sm:$0xff] }
 0x53d   : > { %v3999_v57 = vpack.c.bf16 %v3365_v56, %v3364_v55  ;;  %v3368_v59 = vld [vmem:[%s5765_s17 + $0xa8] sm:$0xff] }
 0x53e   : > { %3487 = vmatpush3.msra.mxu0 %v2466_v58 }
 0x53f   : > { %3489 = vmatmul.mubr.msk.f32.vlgmr.msra.gmra.mrb[16].mxu0 %vm2468_vm12, %v2467_v60  ;;  %3491 = vmatprep.subr.mxu0 %v4214_v7 }
 0x540   : > { %3492 = vmatpush3.msra.mxu0 %v2466_v58  ;;  %3493 = vmatprep.mubr.msk.f32.mxu0 %vm4216_vm11, %v4214_v7  ;;  %v3367_v58 = vld [vmem:[%s5765_s17 + $0xa0] sm:$0xff] }
 0x541   : > { %3971 = vmatprep.subr.bf16.mxu0 %v4215_v53  ;;  %v4002_v60 = vpack.c.bf16 %v3368_v59, %v3367_v58 }
 0x543   : > { %3494 = vmatmul.mubr.msk.f32.vlgmr.msra.gmra.mrb[18].mxu0 %vm2468_vm12, %v2542_v63  ;;  %v3370_v63 = vld [vmem:[%s5765_s17 + $0xb8] sm:$0xff] }
 0x544   : > { %3973 = vmatpush3.bf16.msra.mxu0 %v3972_v0  ;;  %3516 = vmatprep.mubr.msk.f32.mxu0 %vm4216_vm11, %v4214_v7  ;;  %v4005_v0 = vpack.c.bf16 %v3370_v63, %v3369_v62 }
 0x545   : > { %3974 = vmatprep.subr.bf16.mxu0 %v4215_v53 }
 0x548   : > { %3976 = vmatpush3.bf16.msra.mxu0 %v3975_v2  ;;  %v4008_v2 = vpack.c.bf16 %v3372_v1, %v3371_v10 }
 0x549   : > { %3977 = vmatprep.subr.bf16.mxu0 %v4215_v53 }
 0x54c   : > { %3979 = vmatpush3.bf16.msra.mxu0 %v3978_v6  ;;  %v4011_v6 = vpack.c.bf16 %v3374_v4, %v3373_v3 }
 0x54d   : > { %3980 = vmatprep.subr.bf16.mxu0 %v4215_v53 }
 0x550   : > { %3982 = vmatpush3.bf16.msra.mxu0 %v3981_v14  ;;  %v4014_v14 = vpack.c.bf16 %v3376_v13, %v3375_v8 }
 0x551   : > { %3983 = vmatprep.subr.bf16.mxu0 %v4215_v53 }
 0x554   : > { %3985 = vmatpush3.bf16.msra.mxu0 %v3984_v17  ;;  %v4017_v17 = vpack.c.bf16 %v3379_v16, %v3378_v15 }
 0x555   : > { %3986 = vmatprep.subr.bf16.mxu0 %v4215_v53 }
 0x612   : > { %v2538_v31 = vpop.f32.mrb[16].mxu0 }
 0x613   : > { %v3490_v32 = vpop.f32.mrb[17].mxu0 }
 0x614   : > { %v2634_v32 = vld [vmem:[%s5766_s18] sm:$0x1] }
 0x616   : > { %v2612_v5 = vpop.f32.mrb[18].mxu0 }
 0x617   : > { %v2616_v34 = vmax.f32 %v2538_v31, %v2612_v5  ;;  %v3495_v35 = vpop.f32.mrb[19].mxu0  ;;  %v4053_v31 = vpack.c.bf16 %v2995_v30, %v2994_v29 }
 0x618   : > { %v2977_v35 = vld [vmem:[%s5768_s20] sm:$0x1] }
 0x619   : > { %v2624_v37 = vmul.f32 %v3353_v33, %v2616_v34  ;;  %4054 = vmatpush3.bf16.msra.mxu1 %v4053_v31  ;;  %v2975_v33 = vld [vmem:[%s5767_s19] sm:$0x1] }
 0x61b   : > { %v2632_v40 = vadd.f32 %v3354_v36, %v2624_v37 }
 0x61d   : > { %v5562_v42 = vmax.f32 %v2632_v40, 0.0 }
 0x61f   : > { %3517 = vmatmul.mubr.msk.f32.vlgmr.msra.gmra.mrb[20].mxu0 %vm2645_vm13, %v5562_v42  ;;  %v2731_v61 = vrot.slane %v5562_v42, 1  ;;  %v2816_v18 = vrot.slane %v5562_v42, 2  ;;  %v2901_v28 = vrot.slane %v5562_v42, 3 }
 0x620   : > { %3988 = vmatpush3.bf16.msra.mxu0 %v3987_v41  ;;  %3539 = vmatprep.mubr.msk.f32.mxu0 %vm4216_vm11, %v4214_v7 }
 0x621   : > { %3989 = vmatprep.subr.bf16.mxu0 %v4215_v53 }
 0x624   : > { %3991 = vmatpush3.bf16.msra.mxu0 %v3990_v45 }
 0x625   : > { %3992 = vmatprep.subr.bf16.mxu0 %v4215_v53 }
 0x628   : > { %3994 = vmatpush3.bf16.msra.mxu0 %v3993_v11 }
 0x629   : > { %3995 = vmatprep.subr.bf16.mxu0 %v4215_v53 }
 0x62c   : > { %3997 = vmatpush3.bf16.msra.mxu0 %v3996_v52 }
 0x62d   : > { %3998 = vmatprep.subr.bf16.mxu0 %v4215_v53 }
 0x630   : > { %4000 = vmatpush3.bf16.msra.mxu0 %v3999_v57 }
 0x631   : > { %4001 = vmatprep.subr.bf16.mxu0 %v4215_v53 }
 0x633   : > { %3540 = vmatmul.mubr.msk.f32.vlgmr.msra.gmra.mrb[20].mxu0 %vm2645_vm13, %v2731_v61 }
 0x634   : > { %4003 = vmatpush3.bf16.msra.mxu0 %v4002_v60  ;;  %3562 = vmatprep.mubr.msk.f32.mxu0 %vm4216_vm11, %v4214_v7 }
 0x635   : > { %4004 = vmatprep.subr.bf16.mxu0 %v4215_v53 }
 0x638   : > { %4006 = vmatpush3.bf16.msra.mxu0 %v4005_v0 }
 0x639   : > { %4007 = vmatprep.subr.bf16.mxu0 %v4215_v53 }
 0x63c   : > { %4009 = vmatpush3.bf16.msra.mxu0 %v4008_v2 }
 0x63d   : > { %4010 = vmatprep.subr.bf16.mxu0 %v4215_v53 }
 0x640   : > { %4012 = vmatpush3.bf16.msra.mxu0 %v4011_v6 }
 0x641   : > { %4013 = vmatprep.subr.bf16.mxu0 %v4215_v53 }
 0x644   : > { %4015 = vmatpush3.bf16.msra.mxu0 %v4014_v14 }
 0x645   : > { %4016 = vmatprep.subr.bf16.mxu0 %v4215_v53 }
 0x647   : > { %3563 = vmatmul.mubr.msk.f32.vlgmr.msra.gmra.mrb[20].mxu0 %vm2645_vm13, %v2816_v18 }
 0x648   : > { %4018 = vmatpush3.bf16.msra.mxu0 %v4017_v17  ;;  %3585 = vmatprep.mubr.msk.f32.mxu0 %vm4216_vm11, %v4214_v7  ;;  %v3385_v7 = vld [vmem:[%s5765_s17 + $0x128] sm:$0xff] }
 0x649   : > { %4019 = vmatprep.subr.bf16.mxu0 %v4215_v53  ;;  %v4026_v24 = vpack.c.bf16 %v3385_v7, %v3384_v23 }
 0x64c   : > { %4021 = vmatpush3.bf16.msra.mxu0 %v4020_v20 }
 0x64d   : > { %4022 = vmatprep.subr.bf16.mxu0 %v4215_v53 }
 0x650   : > { %4024 = vmatpush3.bf16.msra.mxu0 %v4023_v22 }
 0x651   : > { %4025 = vmatprep.subr.bf16.mxu0 %v4215_v53 }
 0x654   : > { %4027 = vmatpush3.bf16.msra.mxu0 %v4026_v24 }
 0x655   : > { %4028 = vmatprep.subr.bf16.mxu0 %v4215_v53 }
 0x658   : > { %4030 = vmatpush3.bf16.msra.mxu0 %v4029_v27 }
 0x65b   : > { %3586 = vmatmul.mubr.msk.f32.vlgmr.msra.gmra.mrb[20].mxu0 %vm2645_vm13, %v2901_v28 }
 0x72e   : > { %v2970_v5 = vpop.f32.mrb[20].mxu0 }
 0x72f   : > { %v4069_v53 = vadd.f32 %v2970_v5, %v2634_v32  ;;  %v3587_v34 = vpop.f32.mrb[21].mxu0 }
 0x731   : > { %v2976_v36 = vmul.f32 %v4069_v53, %v2975_v33 }
 0x733   : > { %v2978_v37 = vadd.f32 %v2977_v35, %v2976_v36 }
 0x735   : > { %v2979_v38 = vmax.f32 %v2978_v37, 0.0 }
 0x737   : > { %3621 = vmatmul.mubr.f32.vlgmr.msra.gmra.mrb[18].mxu1 %v2979_v38 }
 0x80a   : > { %v3063_v40 = vpop.f32.mrb[18].mxu1 }
 0x80b   : > { %v3064_v41 = vadd.f32 %v3063_v40, %v2996_v39  ;;  %v3622_v42 = vpop.f32.mrb[19].mxu1 }
 0x80d   : > { %v3068_v43 = vsel %vm3067_vm14, %v3064_v41, -inf }
 0x80e   : > { %3069 = vmax.xlane.f32.xlu0 %v3068_v43 }
 0x89b   : > { %v3070_v44 = vpop.xlane.xlu0 %3069 }
 0x89c   : > { %v3071_v45 = vsub.f32 %v3064_v41, %v3070_v44 }
 0x89e   : > { %v3072_v46 = vmul.f32 1.442695, %v3071_v45 }
 0x8a0   : > { %4145 = vpow2.f32 %v3072_v46 }
 0x8aa   : > { %v4146_v47 = vpop.eup %4145 }
 0x8ab   : > { %v3074_v11 = vsel %vm3067_vm14, %v4146_v47, 0.0 }
 0x8ac   : > { %3075 = vadd.xlane.f32.xlu0 %v3074_v11 }
 0x939   : > { %v3076_v48 = vpop.xlane.xlu0 %3075 }
 0x93a   : > { %4147 = vlog2.f32 %v3076_v48 }
 0x944   : > { %v4148_v49 = vpop.eup %4147 }
 0x945   : > { %v3078_v52 = vmul.f32 0.6931472, %v4148_v49 }
 0x947   : > { %v3079_v55 = vsub.f32 %v3071_v45, %v3078_v52 }
 0x949   : > { %3080 = vst [vmem:[%s702_s28] sm:$0x1] %v3079_v55 }
 0x94a   : > { %4162 = shalt.err (!%p4159_p3)
}
 0x94b   : > { %s4163_s7 = scalar_lea.hbm %s5706_s6, 16  ;;  %s4167_s3 = scalar_lea.hbm %s5822_s0, 32 }
 0x94c   : > { %p4164_p4 = scmp.ne.s32.totalorder %s5706_s6, %s4163_s7  ;;  %p4168_p9 = scmp.lt.u32.totalorder %s5706_s6, %s5822_s0 }
 0x94d   : > { %p4169_p10 = scmp.lt.u32.totalorder %s4167_s3, %s4163_s7  ;;  %p4171_p12 = scmp.lt.u32.totalorder %s4163_s7, %s5706_s6 }
 0x94e   : > { %p4165_p7 = pnand %p4164_p4, %p4376_p5 }
 0x94f   : > { %p4170_p11 = por %p4169_p10, %p4168_p9 }
 0x950   : > { %p4166_p8 = pneg %p4165_p7 }
 0x951   : > { %p4172_p13 = por %p4171_p12, %p4170_p11 }
 0x953   : > { %p4173_p0 = pnand %p4172_p13, %p4166_p8 }
 0x955   : > { %4176 = shalt.err (!%p4173_p0)
}
 0x956   : > { %4102 = dma.vmem_to_hbm [thread:$0]  (%p4376_p5), %s5708_s4, 16, %s5706_s6, %s3082_s24  }
 0x957 PF: > { %s5823_s9 = sld [smem:[#allocation7_spill]]  ;;  %s5824_s23 = sld [smem:[#allocation5_spill]] }
 0x95d   : > { %p4108_p1 = scmp.ge.s32.totalorder %s5823_s9, 2  ;;  %s3106_s2 = sand.u32 1, %s5824_s23  }
 0x95e   : > { %s3107_s28 = scalar_lea.sflag [#allocation3], %s3106_s2 }
 0x95f   : > { %p4105_p2 = pnand %p4108_p1, %p4380_p6 }
 0x961   : > { %4194 = dma.done.wait (!%p4105_p2), %s3107_s28, 16  }
 0x962   : > { %4196 = vsyncadd (!%p4105_p2), %s3107_s28, 4294967280  ;;  %s5826_s25 = sld [smem:[#allocation8_spill]]  ;;  %s5827_s7 = sld [smem:[#allocation6_spill]] }
 0x963   : > { %s5828_s24 = sld [smem:[#allocation9_spill]]  ;;  %s5829_s4 = smov %s4203_s30 }
 0x968   : > { %p33_p3 = scmp.ge.s32.totalorder %s5826_s25, 4   ;;  %s5830_s30 = smov %s5827_s7 }
 0x96a   :  { %35 = sbr.rel (!%p33_p3) target bundleno = 15 (0xf), region = 158 }
 0x971   :  { %3111 = vsyncpa [#allocation3], 1 }
 0x972   :  { %3113 = vsyncpa [#allocation3 + $0x1], 1 }

</bundles_post_ra>
